<compile_context>
chip_gen: v7x
topology: tpu7x:2x2x1
jax: 0.10.0
libtpu: 0.0.40
codegen_flags: <defaults>
</compile_context>

<pallas_src>
import functools

import jax
import jax.numpy as jnp
from jax.experimental import pallas as pl
from jax.experimental.pallas import tpu as pltpu


REL_BY_DST = {
    "user": ["user", "item"],   # source node types of relations into 'user'
    "item": ["user"],           # source node types of relations into 'item'
}
LANE = 128                      # lane-dense padded feature width


# ----------------------------------------------------------------------------
# Fused Pallas kernel: both layers, both dst types, skipsum — one launch.
# ----------------------------------------------------------------------------
def _hgnn_skip_block_kernel(au_ref, ai_ref, h0u_ref, h0i_ref,
                            wfu_ref, wiu_ref, bu_ref, bi_ref,
                            ou_ref, oi_ref, *, num_layers):
    """All refs are full arrays resident in VMEM (no grid).

    au_ref : (2, N, N)      bf16  adjacencies into 'user' [user->user, item->user]
    ai_ref : (1, N, N)      bf16  adjacency  into 'item' [user->item]
    h0u/h0i: (N, Dp)        f32   input features, feature dim zero-padded to Dp=128
    wfu_ref: (L, Dp, 2*Dp)  bf16  fused src='user' weights per layer: [W_uu | W_ui]
    wiu_ref: (L, Dp, Dp)    bf16  src='item' -> dst='user' weight per layer
    bu/bi  : (L, 1, Dp)     f32   per-layer biases, pre-summed over relations
    ou/oi  : (N, Dp)        f32   outputs (lane-dense)
    """
    def relu_l2norm(x):                                    # act + F.normalize
        x = jnp.maximum(x, 0.0)
        ssq = jnp.sum(x * x, axis=1, keepdims=True)        # f32; pad cols are 0
        return x * jax.lax.rsqrt(jnp.maximum(ssq, 1e-24))  # == x / max(||x||,1e-12)

    hu = None
    hi = None
    for l in range(num_layers):                            # statically unrolled
        # Layer input in bf16 (read h0 refs only here for layer 0; the f32
        # temporaries die immediately -> short live ranges).
        hu_b = (h0u_ref[...] if l == 0 else hu).astype(jnp.bfloat16)
        hi_b = (h0i_ref[...] if l == 0 else hi).astype(jnp.bfloat16)

        # One 256-wide MXU push for everything with source 'user':
        #   columns [0:128)   -> XW for relation user->user (dst 'user')
        #   columns [128:256) -> XW for relation user->item (dst 'item')
        xw_u = jnp.dot(hu_b, wfu_ref[l],
                       preferred_element_type=jnp.float32).astype(jnp.bfloat16)
        xw_uu = xw_u[:, :LANE]          # lane-aligned zero-cost slices
        xw_ui = xw_u[:, LANE:]

        # Source 'item' -> dst 'user' transform.
        xw_iu = jnp.dot(hi_b, wiu_ref[l],
                        preferred_element_type=jnp.float32).astype(jnp.bfloat16)

        # Relation sum for dst 'user': two dots accumulated in f32
        # (adjacencies read at the call sites; not hoisted).
        new_u = (jnp.dot(au_ref[0], xw_uu, preferred_element_type=jnp.float32)
                 + jnp.dot(au_ref[1], xw_iu, preferred_element_type=jnp.float32)
                 + bu_ref[l])

        # dst 'item': single relation (user -> item).
        new_i = jnp.dot(ai_ref[0], xw_ui,
                        preferred_element_type=jnp.float32) + bi_ref[l]

        # Keep hu/hi in f32 (v5e has no bf16 VALU/EUP; accuracy headroom).
        hu = relu_l2norm(new_u)
        hi = relu_l2norm(new_i)

    # stage_type == 'skipsum': out = relu(h + h0); re-read h0 refs here only.
    ou_ref[...] = jnp.maximum(hu + h0u_ref[...], 0.0)
    oi_ref[...] = jnp.maximum(hi + h0i_ref[...], 0.0)


# ----------------------------------------------------------------------------
# One-time packing / preparation (kept out of the per-call path).
# ----------------------------------------------------------------------------
def pack_params(params, lane=LANE):
    """Pack per-layer weights/biases into padded, MXU-friendly slabs."""
    L = len(params)
    wfu = jnp.zeros((L, lane, 2 * lane), jnp.float32)   # [W_uu | W_ui]
    wiu = jnp.zeros((L, lane, lane), jnp.float32)       # W_iu
    bu = jnp.zeros((L, 1, lane), jnp.float32)
    bi = jnp.zeros((L, 1, lane), jnp.float32)
    for l, p in enumerate(params):
        w_user = p["user"]["W"]                         # (2, d_in, dim)
        w_item = p["item"]["W"]                         # (1, d_in, dim)
        d_in, dim = w_user.shape[1], w_user.shape[2]
        wfu = wfu.at[l, :d_in, :dim].set(w_user[0])                 # user->user
        wfu = wfu.at[l, :d_in, lane:lane + dim].set(w_item[0])      # user->item
        wiu = wiu.at[l, :d_in, :dim].set(w_user[1])                 # item->user
        bu = bu.at[l, 0, :dim].set(p["user"]["b"].sum(axis=0)[0])
        bi = bi.at[l, 0, :dim].set(p["item"]["b"][0, 0])
    return wfu.astype(jnp.bfloat16), wiu.astype(jnp.bfloat16), bu, bi


def prepare_inputs(adjs, h0, lane=LANE):
    """One-time casts / padding so the per-call wrapper has no extra HBM passes."""
    a_user = adjs["user"].astype(jnp.bfloat16)          # (2, N, N)
    a_item = adjs["item"].astype(jnp.bfloat16)          # (1, N, N)
    pad = lambda x: jnp.pad(x, ((0, 0), (0, lane - x.shape[1])))
    h0u = pad(h0["user"]).astype(jnp.float32)
    h0i = pad(h0["item"]).astype(jnp.float32)
    return a_user, a_item, h0u, h0i


@jax.jit
def _fused_forward(a_user, a_item, h0u, h0i, wfu, wiu, bu, bi):
    N = h0u.shape[0]
    L = wfu.shape[0]
    kernel = functools.partial(_hgnn_skip_block_kernel, num_layers=L)
    return pl.pallas_call(
        kernel,
        out_shape=(jax.ShapeDtypeStruct((N, LANE), jnp.float32),
                   jax.ShapeDtypeStruct((N, LANE), jnp.float32)),
        compiler_params=pltpu.CompilerParams(
            vmem_limit_bytes=32 * 1024 * 1024),
    )(a_user, a_item, h0u, h0i, wfu, wiu, bu, bi)


def hgnn_skip_block_forward(adjs, h0, params):
    """Convenience wrapper matching HGNNSkipBlock.forward semantics."""
    dim = h0["user"].shape[1]
    packed = pack_params(params)
    a_user, a_item, h0u, h0i = prepare_inputs(adjs, h0)
    ou, oi = _fused_forward(a_user, a_item, h0u, h0i, *packed)
    return {"user": ou[:, :dim], "item": oi[:, :dim]}


# ----------------------------------------------------------------------------
# Graph / parameter construction and pure-JAX reference (f32).
# ----------------------------------------------------------------------------
def _normalize_adj(a):
    """DGL GraphConv norm='both':  D_in^{-1/2} A D_out^{-1/2} (deg clamped)."""
    deg_in = jnp.clip(jnp.sum(a, axis=1, keepdims=True), 1.0, None)   # (Nd,1)
    deg_out = jnp.clip(jnp.sum(a, axis=0, keepdims=True), 1.0, None)  # (1,Ns)
    return a / jnp.sqrt(deg_in) / jnp.sqrt(deg_out)


def make_graph_and_params(key, n_nodes, dim_in, dim_out, num_layers):
    keys = jax.random.split(key, 64)
    ki = iter(range(64))

    adjs = {}
    for dst, srcs in REL_BY_DST.items():
        mats = []
        for _ in srcs:
            a = jax.random.bernoulli(
                keys[next(ki)], p=0.15, shape=(n_nodes, n_nodes)
            ).astype(jnp.float32)
            mats.append(_normalize_adj(a))
        adjs[dst] = jnp.stack(mats, axis=0)           # (R, Nd, Ns)

    params = []
    for layer in range(num_layers):
        d_in = dim_in if layer == 0 else dim_out
        layer_p = {}
        for dst, srcs in REL_BY_DST.items():
            r = len(srcs)
            scale = 1.0 / jnp.sqrt(jnp.float32(d_in))
            w = scale * jax.random.normal(
                keys[next(ki)], (r, d_in, dim_out), dtype=jnp.float32)
            b = 0.01 * jax.random.normal(
                keys[next(ki)], (r, 1, dim_out), dtype=jnp.float32)
            layer_p[dst] = {"W": w, "b": b}
        params.append(layer_p)
    return adjs, params


def reference_forward(adjs, h0, params):
    """Pure-JAX f32 reference of HGNNSkipBlock.forward (for validation)."""
    h = dict(h0)
    for layer_p in params:
        h_new = {}
        for dst, srcs in REL_BY_DST.items():
            acc = 0.0
            for r, s in enumerate(srcs):
                acc = acc + adjs[dst][r] @ (h[s] @ layer_p[dst]["W"][r]) \
                      + layer_p[dst]["b"][r]
            acc = jnp.maximum(acc, 0.0)
            nrm = jnp.sqrt(jnp.sum(acc * acc, axis=1, keepdims=True))
            h_new[dst] = acc / jnp.maximum(nrm, 1e-12)
        h = h_new
    return {k: jnp.maximum(h[k] + h0[k], 0.0) for k in h0}


# ----------------------------------------------------------------------------
if __name__ == "__main__":
    N = 64          # nodes per node type
    DIM = 32        # dim_in == dim_out (required by skipsum)
    NUM_LAYERS = 2

    key = jax.random.PRNGKey(0)
    k_feat_u, k_feat_i, k_graph = jax.random.split(key, 3)

    h0 = {
        "user": jax.random.normal(k_feat_u, (N, DIM), dtype=jnp.float32),
        "item": jax.random.normal(k_feat_i, (N, DIM), dtype=jnp.float32),
    }
    adjs, params = make_graph_and_params(k_graph, N, DIM, DIM, NUM_LAYERS)

    out = hgnn_skip_block_forward(adjs, h0, params)
    out = jax.tree_util.tree_map(jax.block_until_ready, out)

    ref = reference_forward(adjs, h0, params)

    # TODO(synk): BatchNorm1d (has_bn=True path) and training-mode Dropout are
    # not modeled; this configuration uses has_bn=False / dropout=0 where both
    # are identities.
    for k in out:
        assert out[k].shape == (N, DIM)
        assert bool(jnp.all(jnp.isfinite(out[k])))
        err = float(jnp.max(jnp.abs(out[k] - ref[k])))
        assert err < 5e-2, f"mismatch for {k}: max abs err {err}"
    print("KERNEL_OK")
</pallas_src>

<mosaic_0001>
module attributes {stable_mosaic.version = 11 : i64} {
  func.func @_hgnn_skip_block_kernel(%arg0: memref<2x64x64xbf16, #tpu.memory_space<vmem>>, %arg1: memref<1x64x64xbf16, #tpu.memory_space<vmem>>, %arg2: memref<64x128xf32, #tpu.memory_space<vmem>>, %arg3: memref<64x128xf32, #tpu.memory_space<vmem>>, %arg4: memref<2x128x256xbf16, #tpu.memory_space<vmem>>, %arg5: memref<2x128x128xbf16, #tpu.memory_space<vmem>>, %arg6: memref<2x1x128xf32, #tpu.memory_space<vmem>>, %arg7: memref<2x1x128xf32, #tpu.memory_space<vmem>>, %arg8: memref<64x128xf32, #tpu.memory_space<vmem>>, %arg9: memref<64x128xf32, #tpu.memory_space<vmem>>) attributes {dimension_semantics = [], scalar_prefetch = 0 : i64, scratch_operands = 0 : i64, tpu.core_type = #tpu.core_type<tc>} {
    %c0 = arith.constant 0 : index
    %c0_0 = arith.constant 0 : index
    %0 = vector.load %arg2[%c0, %c0_0] : memref<64x128xf32, #tpu.memory_space<vmem>>, vector<64x128xf32>
    %1 = arith.truncf %0 : vector<64x128xf32> to vector<64x128xbf16>
    %c0_1 = arith.constant 0 : index
    %c0_2 = arith.constant 0 : index
    %2 = vector.load %arg3[%c0_1, %c0_2] : memref<64x128xf32, #tpu.memory_space<vmem>>, vector<64x128xf32>
    %3 = arith.truncf %2 : vector<64x128xf32> to vector<64x128xbf16>
    %c0_3 = arith.constant 0 : index
    %c0_4 = arith.constant 0 : index
    %c0_5 = arith.constant 0 : index
    %4 = vector.load %arg4[%c0_3, %c0_4, %c0_5] : memref<2x128x256xbf16, #tpu.memory_space<vmem>>, vector<1x128x256xbf16>
    %5 = vector.shape_cast %4 : vector<1x128x256xbf16> to vector<128x256xbf16>
    %cst = arith.constant dense<0.000000e+00> : vector<64x256xf32>
    %6 = tpu.matmul %1, %5, %cst {dimension_numbers = #tpu.dot_dimension_numbers<[1], [0], [0], [1], [0, 0, 1, 1], [], []>} : vector<64x128xbf16>, vector<128x256xbf16>, vector<64x256xf32> -> vector<64x256xf32>
    %7 = arith.truncf %6 : vector<64x256xf32> to vector<64x256xbf16>
    %8 = vector.extract_strided_slice %7 {offsets = [0, 0], sizes = [64, 128], strides = [1, 1]} : vector<64x256xbf16> to vector<64x128xbf16>
    %9 = vector.extract_strided_slice %7 {offsets = [0, 128], sizes = [64, 128], strides = [1, 1]} : vector<64x256xbf16> to vector<64x128xbf16>
    %c0_6 = arith.constant 0 : index
    %c0_7 = arith.constant 0 : index
    %c0_8 = arith.constant 0 : index
    %10 = vector.load %arg5[%c0_6, %c0_7, %c0_8] : memref<2x128x128xbf16, #tpu.memory_space<vmem>>, vector<1x128x128xbf16>
    %11 = vector.shape_cast %10 : vector<1x128x128xbf16> to vector<128x128xbf16>
    %cst_9 = arith.constant dense<0.000000e+00> : vector<64x128xf32>
    %12 = tpu.matmul %3, %11, %cst_9 {dimension_numbers = #tpu.dot_dimension_numbers<[1], [0], [0], [1], [0, 0, 1, 1], [], []>} : vector<64x128xbf16>, vector<128x128xbf16>, vector<64x128xf32> -> vector<64x128xf32>
    %13 = arith.truncf %12 : vector<64x128xf32> to vector<64x128xbf16>
    %c0_10 = arith.constant 0 : index
    %c0_11 = arith.constant 0 : index
    %c0_12 = arith.constant 0 : index
    %14 = vector.load %arg0[%c0_10, %c0_11, %c0_12] : memref<2x64x64xbf16, #tpu.memory_space<vmem>>, vector<1x64x64xbf16>
    %15 = vector.shape_cast %14 : vector<1x64x64xbf16> to vector<64x64xbf16>
    %cst_13 = arith.constant dense<0.000000e+00> : vector<64x128xf32>
    %16 = tpu.matmul %15, %8, %cst_13 {dimension_numbers = #tpu.dot_dimension_numbers<[1], [0], [0], [1], [0, 0, 1, 1], [], []>} : vector<64x64xbf16>, vector<64x128xbf16>, vector<64x128xf32> -> vector<64x128xf32>
    %c1 = arith.constant 1 : index
    %c0_14 = arith.constant 0 : index
    %c0_15 = arith.constant 0 : index
    %17 = vector.load %arg0[%c1, %c0_14, %c0_15] : memref<2x64x64xbf16, #tpu.memory_space<vmem>>, vector<1x64x64xbf16>
    %18 = vector.shape_cast %17 : vector<1x64x64xbf16> to vector<64x64xbf16>
    %cst_16 = arith.constant dense<0.000000e+00> : vector<64x128xf32>
    %19 = tpu.matmul %18, %13, %cst_16 {dimension_numbers = #tpu.dot_dimension_numbers<[1], [0], [0], [1], [0, 0, 1, 1], [], []>} : vector<64x64xbf16>, vector<64x128xbf16>, vector<64x128xf32> -> vector<64x128xf32>
    %20 = arith.addf %16, %19 : vector<64x128xf32>
    %c0_17 = arith.constant 0 : index
    %c0_18 = arith.constant 0 : index
    %c0_19 = arith.constant 0 : index
    %21 = vector.load %arg6[%c0_17, %c0_18, %c0_19] : memref<2x1x128xf32, #tpu.memory_space<vmem>>, vector<1x1x128xf32>
    %22 = vector.shape_cast %21 : vector<1x1x128xf32> to vector<1x128xf32>
    %23 = vector.broadcast %22 : vector<1x128xf32> to vector<64x128xf32>
    %24 = arith.addf %20, %23 : vector<64x128xf32>
    %c0_20 = arith.constant 0 : index
    %c0_21 = arith.constant 0 : index
    %c0_22 = arith.constant 0 : index
    %25 = vector.load %arg1[%c0_20, %c0_21, %c0_22] : memref<1x64x64xbf16, #tpu.memory_space<vmem>>, vector<1x64x64xbf16>
    %26 = vector.shape_cast %25 : vector<1x64x64xbf16> to vector<64x64xbf16>
    %cst_23 = arith.constant dense<0.000000e+00> : vector<64x128xf32>
    %27 = tpu.matmul %26, %9, %cst_23 {dimension_numbers = #tpu.dot_dimension_numbers<[1], [0], [0], [1], [0, 0, 1, 1], [], []>} : vector<64x64xbf16>, vector<64x128xbf16>, vector<64x128xf32> -> vector<64x128xf32>
    %c0_24 = arith.constant 0 : index
    %c0_25 = arith.constant 0 : index
    %c0_26 = arith.constant 0 : index
    %28 = vector.load %arg7[%c0_24, %c0_25, %c0_26] : memref<2x1x128xf32, #tpu.memory_space<vmem>>, vector<1x1x128xf32>
    %29 = vector.shape_cast %28 : vector<1x1x128xf32> to vector<1x128xf32>
    %30 = vector.broadcast %29 : vector<1x128xf32> to vector<64x128xf32>
    %31 = arith.addf %27, %30 : vector<64x128xf32>
    %cst_27 = arith.constant 0.000000e+00 : f32
    %32 = vector.broadcast %cst_27 : f32 to vector<64x128xf32>
    %33 = arith.maximumf %24, %32 : vector<64x128xf32>
    %34 = arith.mulf %33, %33 : vector<64x128xf32>
    %cst_28 = arith.constant dense<0.000000e+00> : vector<64xf32>
    %35 = vector.multi_reduction <add>, %34, %cst_28 [1] : vector<64x128xf32> to vector<64xf32>
    %36 = vector.shape_cast %35 : vector<64xf32> to vector<64x1xf32>
    %cst_29 = arith.constant 1.000000e-24 : f32
    %37 = vector.broadcast %cst_29 : f32 to vector<64x1xf32>
    %38 = arith.maximumf %36, %37 : vector<64x1xf32>
    %39 = math.rsqrt %38 : vector<64x1xf32>
    %40 = vector.broadcast %39 : vector<64x1xf32> to vector<64x128xf32>
    %41 = arith.mulf %33, %40 : vector<64x128xf32>
    %cst_30 = arith.constant 0.000000e+00 : f32
    %42 = vector.broadcast %cst_30 : f32 to vector<64x128xf32>
    %43 = arith.maximumf %31, %42 : vector<64x128xf32>
    %44 = arith.mulf %43, %43 : vector<64x128xf32>
    %cst_31 = arith.constant dense<0.000000e+00> : vector<64xf32>
    %45 = vector.multi_reduction <add>, %44, %cst_31 [1] : vector<64x128xf32> to vector<64xf32>
    %46 = vector.shape_cast %45 : vector<64xf32> to vector<64x1xf32>
    %cst_32 = arith.constant 1.000000e-24 : f32
    %47 = vector.broadcast %cst_32 : f32 to vector<64x1xf32>
    %48 = arith.maximumf %46, %47 : vector<64x1xf32>
    %49 = math.rsqrt %48 : vector<64x1xf32>
    %50 = vector.broadcast %49 : vector<64x1xf32> to vector<64x128xf32>
    %51 = arith.mulf %43, %50 : vector<64x128xf32>
    %52 = arith.truncf %41 : vector<64x128xf32> to vector<64x128xbf16>
    %53 = arith.truncf %51 : vector<64x128xf32> to vector<64x128xbf16>
    %c1_33 = arith.constant 1 : index
    %c0_34 = arith.constant 0 : index
    %c0_35 = arith.constant 0 : index
    %54 = vector.load %arg4[%c1_33, %c0_34, %c0_35] : memref<2x128x256xbf16, #tpu.memory_space<vmem>>, vector<1x128x256xbf16>
    %55 = vector.shape_cast %54 : vector<1x128x256xbf16> to vector<128x256xbf16>
    %cst_36 = arith.constant dense<0.000000e+00> : vector<64x256xf32>
    %56 = tpu.matmul %52, %55, %cst_36 {dimension_numbers = #tpu.dot_dimension_numbers<[1], [0], [0], [1], [0, 0, 1, 1], [], []>} : vector<64x128xbf16>, vector<128x256xbf16>, vector<64x256xf32> -> vector<64x256xf32>
    %57 = arith.truncf %56 : vector<64x256xf32> to vector<64x256xbf16>
    %58 = vector.extract_strided_slice %57 {offsets = [0, 0], sizes = [64, 128], strides = [1, 1]} : vector<64x256xbf16> to vector<64x128xbf16>
    %59 = vector.extract_strided_slice %57 {offsets = [0, 128], sizes = [64, 128], strides = [1, 1]} : vector<64x256xbf16> to vector<64x128xbf16>
    %c1_37 = arith.constant 1 : index
    %c0_38 = arith.constant 0 : index
    %c0_39 = arith.constant 0 : index
    %60 = vector.load %arg5[%c1_37, %c0_38, %c0_39] : memref<2x128x128xbf16, #tpu.memory_space<vmem>>, vector<1x128x128xbf16>
    %61 = vector.shape_cast %60 : vector<1x128x128xbf16> to vector<128x128xbf16>
    %cst_40 = arith.constant dense<0.000000e+00> : vector<64x128xf32>
    %62 = tpu.matmul %53, %61, %cst_40 {dimension_numbers = #tpu.dot_dimension_numbers<[1], [0], [0], [1], [0, 0, 1, 1], [], []>} : vector<64x128xbf16>, vector<128x128xbf16>, vector<64x128xf32> -> vector<64x128xf32>
    %63 = arith.truncf %62 : vector<64x128xf32> to vector<64x128xbf16>
    %c0_41 = arith.constant 0 : index
    %c0_42 = arith.constant 0 : index
    %c0_43 = arith.constant 0 : index
    %64 = vector.load %arg0[%c0_41, %c0_42, %c0_43] : memref<2x64x64xbf16, #tpu.memory_space<vmem>>, vector<1x64x64xbf16>
    %65 = vector.shape_cast %64 : vector<1x64x64xbf16> to vector<64x64xbf16>
    %cst_44 = arith.constant dense<0.000000e+00> : vector<64x128xf32>
    %66 = tpu.matmul %65, %58, %cst_44 {dimension_numbers = #tpu.dot_dimension_numbers<[1], [0], [0], [1], [0, 0, 1, 1], [], []>} : vector<64x64xbf16>, vector<64x128xbf16>, vector<64x128xf32> -> vector<64x128xf32>
    %c1_45 = arith.constant 1 : index
    %c0_46 = arith.constant 0 : index
    %c0_47 = arith.constant 0 : index
    %67 = vector.load %arg0[%c1_45, %c0_46, %c0_47] : memref<2x64x64xbf16, #tpu.memory_space<vmem>>, vector<1x64x64xbf16>
    %68 = vector.shape_cast %67 : vector<1x64x64xbf16> to vector<64x64xbf16>
    %cst_48 = arith.constant dense<0.000000e+00> : vector<64x128xf32>
    %69 = tpu.matmul %68, %63, %cst_48 {dimension_numbers = #tpu.dot_dimension_numbers<[1], [0], [0], [1], [0, 0, 1, 1], [], []>} : vector<64x64xbf16>, vector<64x128xbf16>, vector<64x128xf32> -> vector<64x128xf32>
    %70 = arith.addf %66, %69 : vector<64x128xf32>
    %c1_49 = arith.constant 1 : index
    %c0_50 = arith.constant 0 : index
    %c0_51 = arith.constant 0 : index
    %71 = vector.load %arg6[%c1_49, %c0_50, %c0_51] : memref<2x1x128xf32, #tpu.memory_space<vmem>>, vector<1x1x128xf32>
    %72 = vector.shape_cast %71 : vector<1x1x128xf32> to vector<1x128xf32>
    %73 = vector.broadcast %72 : vector<1x128xf32> to vector<64x128xf32>
    %74 = arith.addf %70, %73 : vector<64x128xf32>
    %c0_52 = arith.constant 0 : index
    %c0_53 = arith.constant 0 : index
    %c0_54 = arith.constant 0 : index
    %75 = vector.load %arg1[%c0_52, %c0_53, %c0_54] : memref<1x64x64xbf16, #tpu.memory_space<vmem>>, vector<1x64x64xbf16>
    %76 = vector.shape_cast %75 : vector<1x64x64xbf16> to vector<64x64xbf16>
    %cst_55 = arith.constant dense<0.000000e+00> : vector<64x128xf32>
    %77 = tpu.matmul %76, %59, %cst_55 {dimension_numbers = #tpu.dot_dimension_numbers<[1], [0], [0], [1], [0, 0, 1, 1], [], []>} : vector<64x64xbf16>, vector<64x128xbf16>, vector<64x128xf32> -> vector<64x128xf32>
    %c1_56 = arith.constant 1 : index
    %c0_57 = arith.constant 0 : index
    %c0_58 = arith.constant 0 : index
    %78 = vector.load %arg7[%c1_56, %c0_57, %c0_58] : memref<2x1x128xf32, #tpu.memory_space<vmem>>, vector<1x1x128xf32>
    %79 = vector.shape_cast %78 : vector<1x1x128xf32> to vector<1x128xf32>
    %80 = vector.broadcast %79 : vector<1x128xf32> to vector<64x128xf32>
    %81 = arith.addf %77, %80 : vector<64x128xf32>
    %cst_59 = arith.constant 0.000000e+00 : f32
    %82 = vector.broadcast %cst_59 : f32 to vector<64x128xf32>
    %83 = arith.maximumf %74, %82 : vector<64x128xf32>
    %84 = arith.mulf %83, %83 : vector<64x128xf32>
    %cst_60 = arith.constant dense<0.000000e+00> : vector<64xf32>
    %85 = vector.multi_reduction <add>, %84, %cst_60 [1] : vector<64x128xf32> to vector<64xf32>
    %86 = vector.shape_cast %85 : vector<64xf32> to vector<64x1xf32>
    %cst_61 = arith.constant 1.000000e-24 : f32
    %87 = vector.broadcast %cst_61 : f32 to vector<64x1xf32>
    %88 = arith.maximumf %86, %87 : vector<64x1xf32>
    %89 = math.rsqrt %88 : vector<64x1xf32>
    %90 = vector.broadcast %89 : vector<64x1xf32> to vector<64x128xf32>
    %91 = arith.mulf %83, %90 : vector<64x128xf32>
    %cst_62 = arith.constant 0.000000e+00 : f32
    %92 = vector.broadcast %cst_62 : f32 to vector<64x128xf32>
    %93 = arith.maximumf %81, %92 : vector<64x128xf32>
    %94 = arith.mulf %93, %93 : vector<64x128xf32>
    %cst_63 = arith.constant dense<0.000000e+00> : vector<64xf32>
    %95 = vector.multi_reduction <add>, %94, %cst_63 [1] : vector<64x128xf32> to vector<64xf32>
    %96 = vector.shape_cast %95 : vector<64xf32> to vector<64x1xf32>
    %cst_64 = arith.constant 1.000000e-24 : f32
    %97 = vector.broadcast %cst_64 : f32 to vector<64x1xf32>
    %98 = arith.maximumf %96, %97 : vector<64x1xf32>
    %99 = math.rsqrt %98 : vector<64x1xf32>
    %100 = vector.broadcast %99 : vector<64x1xf32> to vector<64x128xf32>
    %101 = arith.mulf %93, %100 : vector<64x128xf32>
    %c0_65 = arith.constant 0 : index
    %c0_66 = arith.constant 0 : index
    %102 = vector.load %arg2[%c0_65, %c0_66] : memref<64x128xf32, #tpu.memory_space<vmem>>, vector<64x128xf32>
    %103 = arith.addf %91, %102 : vector<64x128xf32>
    %cst_67 = arith.constant 0.000000e+00 : f32
    %104 = vector.broadcast %cst_67 : f32 to vector<64x128xf32>
    %105 = arith.maximumf %103, %104 : vector<64x128xf32>
    %c0_68 = arith.constant 0 : index
    %c0_69 = arith.constant 0 : index
    %106 = vector.load %arg8[%c0_68, %c0_69] : memref<64x128xf32, #tpu.memory_space<vmem>>, vector<64x128xf32>
    tpu.vector_store %arg8[%c0_68, %c0_69], %105 {strides = array<i32>} : memref<64x128xf32, #tpu.memory_space<vmem>>, vector<64x128xf32>,
    %c0_70 = arith.constant 0 : index
    %c0_71 = arith.constant 0 : index
    %107 = vector.load %arg3[%c0_70, %c0_71] : memref<64x128xf32, #tpu.memory_space<vmem>>, vector<64x128xf32>
    %108 = arith.addf %101, %107 : vector<64x128xf32>
    %cst_72 = arith.constant 0.000000e+00 : f32
    %109 = vector.broadcast %cst_72 : f32 to vector<64x128xf32>
    %110 = arith.maximumf %108, %109 : vector<64x128xf32>
    %c0_73 = arith.constant 0 : index
    %c0_74 = arith.constant 0 : index
    %111 = vector.load %arg9[%c0_73, %c0_74] : memref<64x128xf32, #tpu.memory_space<vmem>>, vector<64x128xf32>
    tpu.vector_store %arg9[%c0_73, %c0_74], %110 {strides = array<i32>} : memref<64x128xf32, #tpu.memory_space<vmem>>, vector<64x128xf32>,
    return
  }
}

</mosaic_0001>

<bundles_post_ra>
// kernel: _fused_forward.1
= control target key start
LH: loop header
LB: loop body
LE: loop exit
PB: predicated region body
PF: predicated region fallthrough
CT: control target
= control target key end

     0   :  { %15 = vsyncpa [#allocation3], 0  ;;  %s2770_s0 = inlined_call_operand.hbm [shape: bf16[2,64,64], index: 0, kind: input, shape index: {}]   ;;  %s2771_s1 = inlined_call_operand.hbm [shape: bf16[1,64,64], index: 1, kind: input, shape index: {}]   ;;  %s2772_s2 = inlined_call_operand.hbm [shape: f32[64,128], index: 2, kind: input, shape index: {}]   ;;  %s2773_s3 = inlined_call_operand.hbm [shape: f32[64,128], index: 3, kind: input, shape index: {}]   ;;  %s2774_s4 = inlined_call_operand.hbm [shape: bf16[2,128,256], index: 4, kind: input, shape index: {}]   ;;  %s2775_s5 = inlined_call_operand.hbm [shape: bf16[2,128,128], index: 5, kind: input, shape index: {}]   ;;  %s2776_s6 = inlined_call_operand.vmem [shape: f32[2,1,128], index: 6, kind: input, shape index: {}]   ;;  %s2777_s7 = inlined_call_operand.vmem [shape: f32[2,1,128], index: 7, kind: input, shape index: {}]   ;;  %s2778_s8 = inlined_call_operand.hbm [shape: f32[64,128], index: 8, kind: output, shape index: {0}]   ;;  %s2779_s9 = inlined_call_operand.hbm [shape: f32[64,128], index: 9, kind: output, shape index: {1}]  }
   0x1   :  { %16 = vsyncpa [#allocation6], 0 }
   0x2   :  { %17 = vsyncpa [#allocation9], 0 }
   0x3   :  { %18 = vsyncpa [#allocation12], 0 }
   0x4   :  { %19 = vsyncpa [#allocation4], 0 }
   0x5   :  { %20 = vsyncpa [#allocation15], 0  ;;  %s2315_s30 = smov [#allocation5]   ;;  %s2127_s13 = scalar_lea.hbm %s2771_s1, 512 }
   0x6   :  { %s38_s10 = sshll.u32 %s2315_s30, 4  ;;  %p2128_p0 = scmp.ne.s32.totalorder %s2771_s1, %s2127_s13  ;;  %s39_s10 = int_to_ptr.vmem [resolvable:$true] %s38_s10 }
   0x7   :  { %p2131_p1 = scmp.lt.u32.totalorder %s2127_s13, %s2771_s1 }
   0x9   :  { %p2133_p2 = pnand %p2131_p1, %p2128_p0 }
   0xb   :  { %2136 = shalt.err (!%p2133_p2)
}
   0xc   :  { %s2137_s18 = scalar_lea.vmem %s39_s10, 512  ;;  %p2142_p4 = scmp.lt.s32.totalorder %s39_s10, %s39_s10 }
   0xd   :  { %p2138_p3 = scmp.ne.s32.totalorder %s39_s10, %s2137_s18  ;;  %p2143_p5 = scmp.lt.s32.totalorder %s2137_s18, %s2137_s18 }
   0xf   :  { %p2144_p6 = por %p2143_p5, %p2142_p4 }
  0x11   :  { %p2145_p7 = pnand %p2144_p6, %p2138_p3 }
  0x13   :  { %2148 = shalt.err (!%p2145_p7)
}
  0x14   :  { %s2316_s19 = smov 64   ;;  %s2317_s20 = smov 4  }
  0x15   :  { %44 = dma.hbm_to_vmem [thread:$0]  %s2771_s1, 512, %s39_s10, [#allocation6], %s2316_s19, %s2316_s19, %s2317_s20  }
  0x16   :  { %s2318_s23 = smov [#allocation8]   ;;  %s2319_s25 = smov [#allocation2]  }
  0x17   :  { %s62_s24 = sshll.u32 %s2318_s23, 4  ;;  %s26_s26 = sshll.u32 %s2319_s25, 4  ;;  %s63_s24 = int_to_ptr.vmem [resolvable:$true] %s62_s24  ;;  %s27_s26 = int_to_ptr.vmem [resolvable:$true] %s26_s26 }
  0x18   :  { %s2149_s29 = scalar_lea.hbm %s2773_s3, 1024 }
  0x19   :  { %p2150_p8 = scmp.ne.s32.totalorder %s2773_s3, %s2149_s29  ;;  %p2153_p9 = scmp.lt.u32.totalorder %s2149_s29, %s2773_s3 }
  0x1b   :  { %p2155_p10 = pnand %p2153_p9, %p2150_p8 }
  0x1d   :  { %2158 = shalt.err (!%p2155_p10)
}
  0x1e   :  { %s2159_s1 = scalar_lea.vmem %s63_s24, 1024  ;;  %p2164_p12 = scmp.lt.s32.totalorder %s63_s24, %s63_s24 }
  0x1f   :  { %p2160_p11 = scmp.ne.s32.totalorder %s63_s24, %s2159_s1  ;;  %p2165_p13 = scmp.lt.s32.totalorder %s2159_s1, %s2159_s1 }
  0x21   :  { %p2166_p0 = por %p2165_p13, %p2164_p12 }
  0x23   :  { %p2167_p1 = pnand %p2166_p0, %p2160_p11 }
  0x25   :  { %2170 = shalt.err (!%p2167_p1)
}
  0x26   :  { %s2320_s10 = smov 128   ;;  %s2321_s14 = smov 8  }
  0x27   :  { %68 = dma.hbm_to_vmem [thread:$0]  %s2773_s3, 1024, %s63_s24, [#allocation9], %s2320_s10, %s2320_s10, %s2321_s14  }
  0x28   :  { %s2171_s21 = scalar_lea.hbm %s2770_s0, 1024 }
  0x29   :  { %p2172_p2 = scmp.ne.s32.totalorder %s2770_s0, %s2171_s21  ;;  %p2175_p3 = scmp.lt.u32.totalorder %s2171_s21, %s2770_s0 }
  0x2b   :  { %p2177_p4 = pnand %p2175_p3, %p2172_p2 }
  0x2d   :  { %2180 = shalt.err (!%p2177_p4)
}
  0x2e   :  { %s2181_s28 = scalar_lea.vmem %s27_s26, 1024  ;;  %p2186_p6 = scmp.lt.s32.totalorder %s27_s26, %s27_s26 }
  0x2f   :  { %p2182_p5 = scmp.ne.s32.totalorder %s27_s26, %s2181_s28  ;;  %p2187_p7 = scmp.lt.s32.totalorder %s2181_s28, %s2181_s28 }
  0x31   :  { %p2188_p8 = por %p2187_p7, %p2186_p6 }
  0x33   :  { %p2189_p9 = pnand %p2188_p8, %p2182_p5 }
  0x35   :  { %2192 = shalt.err (!%p2189_p9)
}
  0x36   :  { %32 = dma.hbm_to_vmem [thread:$0]  %s2770_s0, 1024, %s27_s26, [#allocation3], %s2316_s19, %s2316_s19, %s2317_s20  }
  0x37   :  { %s2322_s29 = smov [#allocation7]   ;;  %s2323_s11 = smov [#allocation10]  }
  0x38   :  { %s50_s30 = sshll.u32 %s2322_s29, 4  ;;  %s74_s12 = sshll.u32 %s2323_s11, 4  ;;  %s51_s30 = int_to_ptr.vmem [resolvable:$true] %s50_s30  ;;  %s75_s12 = int_to_ptr.vmem [resolvable:$true] %s74_s12 }
  0x39   :  { %s2193_s15 = scalar_lea.hbm %s2772_s2, 1024 }
  0x3a   :  { %p2194_p10 = scmp.ne.s32.totalorder %s2772_s2, %s2193_s15  ;;  %p2197_p11 = scmp.lt.u32.totalorder %s2193_s15, %s2772_s2 }
  0x3c   :  { %p2199_p12 = pnand %p2197_p11, %p2194_p10 }
  0x3e   :  { %2202 = shalt.err (!%p2199_p12)
}
  0x3f   :  { %s2203_s0 = scalar_lea.vmem %s51_s30, 1024  ;;  %p2208_p0 = scmp.lt.s32.totalorder %s51_s30, %s51_s30 }
  0x40   :  { %p2204_p13 = scmp.ne.s32.totalorder %s51_s30, %s2203_s0  ;;  %p2209_p1 = scmp.lt.s32.totalorder %s2203_s0, %s2203_s0 }
  0x42   :  { %p2210_p2 = por %p2209_p1, %p2208_p0 }
  0x44   :  { %p2211_p3 = pnand %p2210_p2, %p2204_p13 }
  0x46   :  { %2214 = shalt.err (!%p2211_p3)
}
  0x47   :  { %56 = dma.hbm_to_vmem [thread:$0]  %s2772_s2, 1024, %s51_s30, [#allocation6], %s2320_s10, %s2320_s10, %s2321_s14  }
  0x48   :  { %s2215_s27 = scalar_lea.hbm %s2774_s4, 4096 }
  0x49   :  { %p2216_p4 = scmp.ne.s32.totalorder %s2774_s4, %s2215_s27  ;;  %p2219_p5 = scmp.lt.u32.totalorder %s2215_s27, %s2774_s4 }
  0x4b   :  { %p2221_p6 = pnand %p2219_p5, %p2216_p4 }
  0x4d   :  { %2224 = shalt.err (!%p2221_p6)
}
  0x4e   :  { %s2225_s11 = scalar_lea.vmem %s75_s12, 4096  ;;  %p2230_p8 = scmp.lt.s32.totalorder %s75_s12, %s75_s12 }
  0x4f   :  { %p2226_p7 = scmp.ne.s32.totalorder %s75_s12, %s2225_s11  ;;  %p2231_p9 = scmp.lt.s32.totalorder %s2225_s11, %s2225_s11 }
  0x51   :  { %p2232_p10 = por %p2231_p9, %p2230_p8 }
  0x53   :  { %p2233_p11 = pnand %p2232_p10, %p2226_p7 }
  0x55   :  { %2236 = shalt.err (!%p2233_p11)
}
  0x56   :  { %80 = dma.hbm_to_vmem [thread:$0]  %s2774_s4, 4096, %s75_s12, [#allocation9], %s2320_s10, %s2320_s10, %s2321_s14  }
  0x57   :  { %s2324_s13 = smov [#allocation11]   ;;  %s2237_s17 = scalar_lea.hbm %s2775_s5, 2048 }
  0x58   :  { %s86_s1 = sshll.u32 %s2324_s13, 4  ;;  %p2238_p12 = scmp.ne.s32.totalorder %s2775_s5, %s2237_s17  ;;  %s87_s1 = int_to_ptr.vmem [resolvable:$true] %s86_s1 }
  0x59   :  { %p2241_p13 = scmp.lt.u32.totalorder %s2237_s17, %s2775_s5 }
  0x5b   :  { %p2243_p0 = pnand %p2241_p13, %p2238_p12 }
  0x5d   :  { %2246 = shalt.err (!%p2243_p0)
}
  0x5e   :  { %s2247_s22 = scalar_lea.vmem %s87_s1, 2048  ;;  %p2252_p2 = scmp.lt.s32.totalorder %s87_s1, %s87_s1 }
  0x5f   :  { %p2248_p1 = scmp.ne.s32.totalorder %s87_s1, %s2247_s22  ;;  %p2253_p3 = scmp.lt.s32.totalorder %s2247_s22, %s2247_s22 }
  0x61   :  { %p2254_p4 = por %p2253_p3, %p2252_p2 }
  0x63   :  { %p2255_p5 = pnand %p2254_p4, %p2248_p1 }
  0x65   :  { %2258 = shalt.err (!%p2255_p5)
}
  0x66   :  { %92 = dma.hbm_to_vmem [thread:$0]  %s2775_s5, 2048, %s87_s1, [#allocation12], %s2316_s19, %s2316_s19, %s2317_s20  }
  0x67   :  { %2303 = dma.done.wait [#allocation3], 1024  }
  0x68   :  { %2304 = vsyncadd [#allocation3], 4294966272 }
  0x69   :  { %2305 = dma.done.wait [#allocation6], 1536  }
  0x6a   :  { %2306 = vsyncadd [#allocation6], 4294965760 }
  0x6b   :  { %2307 = dma.done.wait [#allocation9], 5120  }
  0x6c   :  { %2308 = vsyncadd [#allocation9], 4294962176 }
  0x6d   :  { %2309 = dma.done.wait [#allocation12], 2048  }
  0x6e   :  { %2310 = vsyncadd [#allocation12], 4294965248  ;;  %v2325_v0 = vmov 0   ;;  %v1979_v1 = vld [vmem:[#allocation10 + $0x4] ss:$8 sps:$4 sm:$0xff]   ;;  %v1989_v8 = vld [vmem:[#allocation11 + $0x10] sm:$0xff]  }
  0x6f   :  { %268 = vmatprep.mubr.bf16.mxu0 %v2325_v0  ;;  %v1981_v2 = vld [vmem:[#allocation11] sm:$0xff]   ;;  %236 = vmatprep.subr.bf16.mxu0 %v1979_v1  ;;  %v1983_v4 = vld [vmem:[#allocation10 + $0x14] ss:$8 sps:$4 sm:$0xff]   ;;  %v1985_v5 = vld [vmem:[#allocation11 + $0x8] sm:$0xff]   ;;  %vm487_vm0 = vcmask 523264   ;;  %s2327_s24 = smov [#allocation14]  }
  0x70   :  { %v1982_v3 = vld [vmem:[#allocation10] ss:$8 sps:$4 sm:$0xff]   ;;  %1806 = vmatprep.subr.bf16.mxu1 %v1981_v2  ;;  %v1986_v6 = vld [vmem:[#allocation10 + $0x10] ss:$8 sps:$4 sm:$0xff]   ;;  %v1987_v7 = vld [vmem:[#allocation10 + $0x24] ss:$8 sps:$4 sm:$0xff]  }
  0x71   :  { %237 = vmatpush1.bf16.msra.mxu0 %v1982_v3  ;;  %1807 = vmatpush3.bf16.msra.mxu1 %v1981_v2  ;;  %v1990_v9 = vld [vmem:[#allocation10 + $0x20] ss:$8 sps:$4 sm:$0xff]   ;;  %v1991_v10 = vld [vmem:[#allocation10 + $0x34] ss:$8 sps:$4 sm:$0xff]   ;;  %v1994_v12 = vld [vmem:[#allocation10 + $0x30] ss:$8 sps:$4 sm:$0xff]  }
  0x72   :  { %238 = vmatprep.subr.bf16.mxu0 %v1983_v4  ;;  %1808 = vmatprep.subr.bf16.mxu1 %v1985_v5  ;;  %v1993_v11 = vld [vmem:[#allocation11 + $0x18] sm:$0xff]   ;;  %v1995_v13 = vld [vmem:[#allocation10 + $0x44] ss:$8 sps:$4 sm:$0xff]   ;;  %v1998_v15 = vld [vmem:[#allocation10 + $0x40] ss:$8 sps:$4 sm:$0xff]   ;;  %s1625_s29 = sshll.u32 %s2327_s24, 4  ;;  %s1626_s29 = int_to_ptr.vmem [resolvable:$true] %s1625_s29 }
  0x73   :  { %v1997_v14 = vld [vmem:[#allocation11 + $0x20] sm:$0xff]   ;;  %v1999_v16 = vld [vmem:[#allocation10 + $0x54] ss:$8 sps:$4 sm:$0xff]   ;;  %v2001_v17 = vld [vmem:[#allocation11 + $0x28] sm:$0xff]  }
  0x74   :  { %v128_v18 = vld [vmem:[#allocation8] sm:$0xff]  ;;  %v129_v19 = vld [vmem:[#allocation8 + $0x8] sm:$0xff]  ;;  %v2002_v20 = vld [vmem:[#allocation10 + $0x50] ss:$8 sps:$4 sm:$0xff]  }
  0x75   :  { %239 = vmatpush1.bf16.msra.mxu0 %v1986_v6  ;;  %1809 = vmatpush3.bf16.msra.mxu1 %v1985_v5  ;;  %v136_v21 = vpack.c.bf16 %v129_v19, %v128_v18  ;;  %v2003_v22 = vld [vmem:[#allocation10 + $0x64] ss:$8 sps:$4 sm:$0xff]   ;;  %v2005_v23 = vld [vmem:[#allocation11 + $0x30] sm:$0xff]   ;;  %v2006_v24 = vld [vmem:[#allocation10 + $0x60] ss:$8 sps:$4 sm:$0xff]  }
  0x76   :  { %240 = vmatprep.subr.bf16.mxu0 %v1987_v7  ;;  %1810 = vmatprep.subr.bf16.mxu1 %v1989_v8  ;;  %v2007_v25 = vld [vmem:[#allocation10 + $0x74] ss:$8 sps:$4 sm:$0xff]   ;;  %v2010_v27 = vld [vmem:[#allocation10 + $0x70] ss:$8 sps:$4 sm:$0xff]   ;;  %v116_v28 = vld [vmem:[#allocation7] sm:$0xff] }
  0x77   :  { %1822 = vmatprep.mubr.bf16.mxu1 %v136_v21  ;;  %v2009_v26 = vld [vmem:[#allocation11 + $0x38] sm:$0xff]   ;;  %v117_v29 = vld [vmem:[#allocation7 + $0x8] sm:$0xff]  ;;  %v130_v30 = vld [vmem:[#allocation8 + $0x10] sm:$0xff] }
  0x78   :  { %v131_v31 = vld [vmem:[#allocation8 + $0x18] sm:$0xff]  ;;  %v132_v32 = vld [vmem:[#allocation8 + $0x20] sm:$0xff]  ;;  %v133_v33 = vld [vmem:[#allocation8 + $0x28] sm:$0xff]  ;;  %v124_v34 = vpack.c.bf16 %v117_v29, %v116_v28 }
  0x79   :  { %241 = vmatpush1.bf16.msra.mxu0 %v1990_v9  ;;  %1811 = vmatpush3.bf16.msra.mxu1 %v1989_v8  ;;  %v137_v35 = vpack.c.bf16 %v131_v31, %v130_v30  ;;  %v138_v36 = vpack.c.bf16 %v133_v33, %v132_v32  ;;  %v118_v37 = vld [vmem:[#allocation7 + $0x10] sm:$0xff]  ;;  %v119_v38 = vld [vmem:[#allocation7 + $0x18] sm:$0xff]  ;;  %v120_v43 = vld [vmem:[#allocation7 + $0x20] sm:$0xff] }
  0x7a   :  { %242 = vmatprep.subr.bf16.mxu0 %v1991_v10  ;;  %1812 = vmatprep.subr.bf16.mxu1 %v1993_v11  ;;  %v134_v39 = vld [vmem:[#allocation8 + $0x30] sm:$0xff]  ;;  %v135_v40 = vld [vmem:[#allocation8 + $0x38] sm:$0xff]  ;;  %v125_v41 = vpack.c.bf16 %v119_v38, %v118_v37  ;;  %v121_v44 = vld [vmem:[#allocation7 + $0x28] sm:$0xff] }
  0x7b   :  { %v139_v42 = vpack.c.bf16 %v135_v40, %v134_v39  ;;  %v126_v45 = vpack.c.bf16 %v121_v44, %v120_v43  ;;  %v122_v46 = vld [vmem:[#allocation7 + $0x30] sm:$0xff]  ;;  %v123_v47 = vld [vmem:[#allocation7 + $0x38] sm:$0xff]  ;;  %v2472_v49 = vld [vmem:[#allocation2 + $0x20] sm:$0xff]  }
  0x7c   :  { %v127_v48 = vpack.c.bf16 %v123_v47, %v122_v46  ;;  %v2476_v50 = vld [vmem:[#allocation5] sm:$0xff]   ;;  %v2482_v19 = vld [vmem:[#allocation2 + $0x30] sm:$0xff]   ;;  %v2494_v28 = vld [vmem:[#allocation5 + $0x8] sm:$0xff]  }
  0x7d   :  { %243 = vmatpush1.bf16.msra.mxu0 %v1994_v12  ;;  %1813 = vmatpush3.bf16.msra.mxu1 %v1993_v11  ;;  %v2496_v29 = vld [vmem:[#allocation5 + $0x10] sm:$0xff]   ;;  %v2502_v30 = vld [vmem:[#allocation2 + $0x8] sm:$0xff]   ;;  %v2510_v32 = vld [vmem:[#allocation5 + $0x18] sm:$0xff]  }
  0x7e   :  { %244 = vmatprep.subr.bf16.mxu0 %v1995_v13  ;;  %1814 = vmatprep.subr.bf16.mxu1 %v1997_v14  ;;  %v2506_v31 = vld [vmem:[#allocation2 + $0x10] sm:$0xff]   ;;  %v2516_v33 = vld [vmem:[#allocation2 + $0x18] sm:$0xff]   ;;  %v2027_v37 = vld [vmem:[#allocation11 + $0x48] sm:$0xff]  }
  0x7f   :  { %v2030_v38 = vld [vmem:[#allocation10 + $0x94] ss:$8 sps:$4 sm:$0xff]   ;;  %v2028_v39 = vld [vmem:[#allocation10 + $0x90] ss:$8 sps:$4 sm:$0xff]  }
  0x80   :  { %v2031_v40 = vld [vmem:[#allocation11 + $0x50] sm:$0xff]  }
  0x81   :  { %245 = vmatpush1.bf16.msra.mxu0 %v1998_v15  ;;  %1815 = vmatpush3.bf16.msra.mxu1 %v1997_v14  ;;  %v2480_v15 = vld [vmem:[#allocation2 + $0x28] sm:$0xff]  }
  0x82   :  { %246 = vmatprep.subr.bf16.mxu0 %v1999_v16  ;;  %1816 = vmatprep.subr.bf16.mxu1 %v2001_v17 }
  0x85   :  { %247 = vmatpush1.bf16.msra.mxu0 %v2002_v20  ;;  %1817 = vmatpush3.bf16.msra.mxu1 %v2001_v17 }
  0x86   :  { %248 = vmatprep.subr.bf16.mxu0 %v2003_v22  ;;  %1818 = vmatprep.subr.bf16.mxu1 %v2005_v23 }
  0x89   :  { %249 = vmatpush1.bf16.msra.mxu0 %v2006_v24  ;;  %1819 = vmatpush3.bf16.msra.mxu1 %v2005_v23  ;;  %v2488_v23 = vld [vmem:[#allocation2 + $0x38] sm:$0xff]  }
  0x8a   :  { %250 = vmatprep.subr.bf16.mxu0 %v2007_v25  ;;  %1820 = vmatprep.subr.bf16.mxu1 %v2009_v26 }
  0x8d   :  { %251 = vmatpush1.bf16.msra.mxu0 %v2010_v27  ;;  %1821 = vmatpush3.bf16.msra.mxu1 %v2009_v26  ;;  %v2490_v27 = vld [vmem:[#allocation2] sm:$0xff]  }
  0x90   :  { %269 = vmatmul.mubr.bf16.vlgmr.msra.gmra.mrb[0].mxu0 %v124_v34  ;;  %1823 = vmatmul.mubr.bf16.vlgmr.msra.gmra.mrb[0].mxu1 %v137_v35  ;;  %v2023_v34 = vld [vmem:[#allocation11 + $0x40] sm:$0xff]  }
  0x91   :  { %278 = vmatprep.mubr.bf16.mxu0 %v2325_v0  ;;  %1826 = vmatprep.mubr.bf16.mxu1 %v138_v36  ;;  %v2024_v35 = vld [vmem:[#allocation10 + $0x80] ss:$8 sps:$4 sm:$0xff]   ;;  %v2026_v36 = vld [vmem:[#allocation10 + $0x84] ss:$8 sps:$4 sm:$0xff]  }
  0x98   :  { %279 = vmatmul.mubr.bf16.gmra.mrb[4].mxu0 %v125_v41  ;;  %1827 = vmatmul.mubr.bf16.gmra.mrb[4].mxu1 %v139_v42  ;;  %v1685_v41 = vld [vmem:[%s2777_s7] ss:$0 sm:$0xff] }
  0x99   :  { %288 = vmatprep.mubr.bf16.mxu0 %v2325_v0  ;;  %1838 = vmatprep.mubr.msk.bf16.mxu1 %vm487_vm0, %v2472_v49 }
  0xa0   :  { %289 = vmatmul.mubr.bf16.gmra.mrb[8].mxu0 %v126_v45 }
  0xa1   :  { %298 = vmatprep.mubr.bf16.mxu0 %v2325_v0 }
  0xa8   :  { %299 = vmatmul.mubr.bf16.gmra.mrb[12].mxu0 %v127_v48 }
  0xa9   :  { %1870 = vmatprep.mubr.msk.bf16.mxu0 %vm487_vm0, %v2476_v50 }
 0x163   :  { %v270_v51 = vpop.f32.mrb[0].mxu0  ;;  %v1824_v52 = vpop.f32.mrb[0].mxu1 }
 0x164   :  { %v272_v53 = vpop.f32.mrb[1].mxu0  ;;  %v415_v54 = vpop.f32.mrb[1].mxu1 }
 0x165   :  { %v274_v55 = vpop.f32.mrb[2].mxu0  ;;  %v1825_v56 = vpop.f32.mrb[2].mxu1 }
 0x166   :  { %v309_v57 = vpack.c.bf16 %v274_v55, %v270_v51  ;;  %v447_v58 = vpack.c.bf16 %v1825_v56, %v1824_v52  ;;  %v276_v59 = vpop.f32.mrb[3].mxu0  ;;  %v418_v60 = vpop.f32.mrb[3].mxu1  ;;  %v2529_v52 = vld [vmem:[%s2776_s6] ss:$0 sm:$0xff] }
 0x167   :  { %v310_v61 = vpack.c.bf16 %v276_v59, %v272_v53  ;;  %v446_v62 = vpack.c.bf16 %v418_v60, %v415_v54 }
 0x169   :  { %1830 = vmatprep.subr.bf16.mxu1 %v446_v62  ;;  %1862 = vmatprep.subr.bf16.mxu0 %v310_v61 }
 0x16a   :  { %1831 = vmatpush3.bf16.msra.mxu1 %v446_v62  ;;  %1863 = vmatpush3.bf16.msra.mxu0 %v310_v61 }
 0x16b   :  { %v280_v63 = vpop.f32.mrb[4].mxu0  ;;  %v1828_v1 = vpop.f32.mrb[4].mxu1  ;;  %1832 = vmatprep.subr.bf16.mxu1 %v447_v58 }
 0x16c   :  { %v282_v2 = vpop.f32.mrb[5].mxu0  ;;  %v431_v3 = vpop.f32.mrb[5].mxu1 }
 0x16d   :  { %v284_v4 = vpop.f32.mrb[6].mxu0  ;;  %v1829_v5 = vpop.f32.mrb[6].mxu1 }
 0x16e   :  { %v311_v6 = vpack.c.bf16 %v284_v4, %v280_v63  ;;  %v449_v7 = vpack.c.bf16 %v1829_v5, %v1828_v1  ;;  %v286_v8 = vpop.f32.mrb[7].mxu0  ;;  %v434_v9 = vpop.f32.mrb[7].mxu1  ;;  %1833 = vmatpush3.bf16.msra.mxu1 %v447_v58 }
 0x16f   :  { %v312_v10 = vpack.c.bf16 %v286_v8, %v282_v2  ;;  %v448_v11 = vpack.c.bf16 %v434_v9, %v431_v3 }
 0x171   :  { %1834 = vmatprep.subr.bf16.mxu1 %v448_v11  ;;  %1864 = vmatprep.subr.bf16.mxu0 %v312_v10 }
 0x172   :  { %1835 = vmatpush3.bf16.msra.mxu1 %v448_v11  ;;  %1865 = vmatpush3.bf16.msra.mxu0 %v312_v10 }
 0x173   :  { %v290_v12 = vpop.f32.mrb[8].mxu0  ;;  %1836 = vmatprep.subr.bf16.mxu1 %v449_v7 }
 0x174   :  { %v292_v13 = vpop.f32.mrb[9].mxu0 }
 0x175   :  { %v294_v14 = vpop.f32.mrb[10].mxu0 }
 0x176   :  { %v313_v16 = vpack.c.bf16 %v294_v14, %v290_v12  ;;  %v296_v17 = vpop.f32.mrb[11].mxu0  ;;  %1837 = vmatpush3.bf16.msra.mxu1 %v449_v7 }
 0x177   :  { %v314_v18 = vpack.c.bf16 %v296_v17, %v292_v13  ;;  %1846 = vmatprep.subr.bf16.mxu1 %v309_v57 }
 0x179   :  { %1839 = vmatmul.mubr.msk.bf16.vlgmr.msra.gmra.mrb[8].mxu1 %vm487_vm0, %v2480_v15  ;;  %1866 = vmatprep.subr.bf16.mxu0 %v314_v18 }
 0x17a   :  { %1847 = vmatpush3.bf16.msra.mxu1 %v309_v57  ;;  %1867 = vmatpush3.bf16.msra.mxu0 %v314_v18 }
 0x17b   :  { %v300_v20 = vpop.f32.mrb[12].mxu0  ;;  %1848 = vmatprep.subr.bf16.mxu1 %v311_v6  ;;  %1842 = vmatprep.mubr.msk.bf16.mxu1 %vm487_vm0, %v2482_v19 }
 0x17c   :  { %v302_v21 = vpop.f32.mrb[13].mxu0 }
 0x17d   :  { %v304_v22 = vpop.f32.mrb[14].mxu0 }
 0x17e   :  { %v315_v24 = vpack.c.bf16 %v304_v22, %v300_v20  ;;  %v306_v25 = vpop.f32.mrb[15].mxu0  ;;  %1849 = vmatpush3.bf16.msra.mxu1 %v311_v6 }
 0x17f   :  { %v316_v26 = vpack.c.bf16 %v306_v25, %v302_v21  ;;  %1850 = vmatprep.subr.bf16.mxu1 %v313_v16 }
 0x181   :  { %1843 = vmatmul.mubr.msk.bf16.gmra.mrb[12].mxu1 %vm487_vm0, %v2488_v23  ;;  %1868 = vmatprep.subr.bf16.mxu0 %v316_v26 }
 0x182   :  { %1851 = vmatpush3.bf16.msra.mxu1 %v313_v16  ;;  %1869 = vmatpush3.bf16.msra.mxu0 %v316_v26 }
 0x183   :  { %1852 = vmatprep.subr.bf16.mxu1 %v315_v24  ;;  %1854 = vmatprep.mubr.msk.bf16.mxu1 %vm487_vm0, %v2490_v27 }
 0x184   :  { %1006 = vmatprep.subr.bf16.mxu0 %v2026_v36 }
 0x185   :  { %1871 = vmatmul.mubr.msk.bf16.vlgmr.msra.gmra.mrb[16].mxu0 %vm487_vm0, %v2494_v28 }
 0x186   :  { %1853 = vmatpush3.bf16.msra.mxu1 %v315_v24  ;;  %1874 = vmatprep.mubr.msk.bf16.mxu0 %vm487_vm0, %v2496_v29 }
 0x187   :  { %1878 = vmatprep.subr.bf16.mxu1 %v2023_v34  ;;  %1007 = vmatpush1.bf16.msra.mxu0 %v2024_v35 }
 0x188   :  { %1008 = vmatprep.subr.bf16.mxu0 %v2030_v38 }
 0x189   :  { %1855 = vmatmul.mubr.msk.bf16.vlgmr.msra.gmra.mrb[8].mxu1 %vm487_vm0, %v2502_v30 }
 0x18a   :  { %1858 = vmatprep.mubr.msk.bf16.mxu1 %vm487_vm0, %v2506_v31  ;;  %1879 = vmatpush3.bf16.msra.mxu1 %v2023_v34 }
 0x18b   :  { %1880 = vmatprep.subr.bf16.mxu1 %v2027_v37  ;;  %1009 = vmatpush1.bf16.msra.mxu0 %v2028_v39 }
 0x18d   :  { %1875 = vmatmul.mubr.msk.bf16.gmra.mrb[20].mxu0 %vm487_vm0, %v2510_v32 }
 0x18e   :  { %1038 = vmatprep.mubr.bf16.mxu0 %v2325_v0  ;;  %1881 = vmatpush3.bf16.msra.mxu1 %v2027_v37 }
 0x18f   :  { %1882 = vmatprep.subr.bf16.mxu1 %v2031_v40 }
 0x191   :  { %1859 = vmatmul.mubr.msk.bf16.gmra.mrb[12].mxu1 %vm487_vm0, %v2516_v33 }
 0x192   :  { %1883 = vmatpush3.bf16.msra.mxu1 %v2031_v40 }
 0x258   :  { %v1872_v42 = vpop.f32.mrb[16].mxu0 }
 0x259   :  { %v767_v43 = vadd.f32 %v1872_v42, %v1685_v41  ;;  %v758_v44 = vpop.f32.mrb[17].mxu0 }
 0x25a   :  { %v759_v45 = vadd.f32 %v1685_v41, %v758_v44  ;;  %v1873_v46 = vpop.f32.mrb[18].mxu0 }
 0x25b   :  { %v2524_v47 = vmax.f32 %v767_v43, 0.0  ;;  %v770_v48 = vadd.f32 %v1873_v46, %v1685_v41  ;;  %v761_v51 = vpop.f32.mrb[19].mxu0  ;;  %v2035_v46 = vld [vmem:[#allocation11 + $0x58] sm:$0xff]  }
 0x25c   :  { %v2531_v53 = vmax.f32 %v759_v45, 0.0  ;;  %v762_v54 = vadd.f32 %v1685_v41, %v761_v51  ;;  %v1856_v55 = vpop.f32.mrb[8].mxu1  ;;  %v2032_v45 = vld [vmem:[#allocation10 + $0xa0] ss:$8 sps:$4 sm:$0xff]   ;;  %1884 = vmatprep.subr.bf16.mxu1 %v2035_v46 }
 0x25d   :  { %v2533_v56 = vmax.f32 %v770_v48, 0.0  ;;  %v631_v57 = vpop.f32.mrb[9].mxu1  ;;  %v855_v58 = vmul.f32 %v2524_v47, %v2524_v47  ;;  %v671_v35 = vadd.f32 %v1856_v55, %v2529_v52  ;;  %v2038_v55 = vld [vmem:[#allocation10 + $0xb4] ss:$8 sps:$4 sm:$0xff]   ;;  %1885 = vmatpush3.bf16.msra.mxu1 %v2035_v46 }
 0x25e   :  { %v2537_v59 = vmax.f32 %v762_v54, 0.0  ;;  %v669_v60 = vadd.f32 %v2529_v52, %v631_v57  ;;  %v1857_v61 = vpop.f32.mrb[10].mxu1  ;;  %v853_v62 = vmul.f32 %v2531_v53, %v2531_v53 }
 0x25f   :  { %v634_v63 = vpop.f32.mrb[11].mxu1  ;;  %865 = vadd.xlane.f32.xlu1 %v855_v58  ;;  %v856_v4 = vmul.f32 %v2533_v56, %v2533_v56  ;;  %v672_v26 = vadd.f32 %v1857_v61, %v2529_v52  ;;  %v2574_v42 = vmax.f32 %v671_v35, 0.0  ;;  %v2036_v61 = vld [vmem:[#allocation10 + $0xb0] ss:$8 sps:$4 sm:$0xff]  }
 0x260   :  { %v670_v1 = vadd.f32 %v2529_v52, %v634_v63  ;;  %v1876_v2 = vpop.f32.mrb[20].mxu0  ;;  %861 = vadd.xlane.f32.xlu0 %v853_v62  ;;  %v2545_v5 = vmax.f32 %v669_v60, 0.0  ;;  %v854_v9 = vmul.f32 %v2537_v59, %v2537_v59  ;;  %v2039_v62 = vld [vmem:[#allocation11 + $0x60] sm:$0xff]  }
 0x261   :  { %v774_v3 = vpop.f32.mrb[21].mxu0  ;;  %v783_v17 = vadd.f32 %v1876_v2, %v1685_v41  ;;  %v2569_v38 = vmax.f32 %v672_v26, 0.0  ;;  %v799_v60 = vmul.f32 %v2574_v42, %v2574_v42  ;;  %1886 = vmatprep.subr.bf16.mxu1 %v2039_v62  ;;  %v2042_v2 = vld [vmem:[#allocation10 + $0xc4] ss:$8 sps:$4 sm:$0xff]  }
 0x262   :  { %v2547_v6 = vmax.f32 %v670_v1, 0.0  ;;  %v775_v7 = vadd.f32 %v1685_v41, %v774_v3  ;;  %v1877_v8 = vpop.f32.mrb[22].mxu0  ;;  %v797_v22 = vmul.f32 %v2545_v5, %v2545_v5  ;;  %1887 = vmatpush3.bf16.msra.mxu1 %v2039_v62 }
 0x263   :  { %867 = vadd.xlane.f32.xlu1 %v856_v4  ;;  %v777_v10 = vpop.f32.mrb[23].mxu0  ;;  %v786_v14 = vadd.f32 %v1877_v8, %v1685_v41  ;;  %v2565_v36 = vmax.f32 %v783_v17, 0.0  ;;  %v800_v54 = vmul.f32 %v2569_v38, %v2569_v38  ;;  %v2040_v4 = vld [vmem:[#allocation10 + $0xc0] ss:$8 sps:$4 sm:$0xff]   ;;  %v2054_v17 = vld [vmem:[#allocation10 + $0xf4] ss:$8 sps:$4 sm:$0xff]  }
 0x264   :  { %v778_v11 = vadd.f32 %v1685_v41, %v777_v10  ;;  %v1860_v12 = vpop.f32.mrb[12].mxu1  ;;  %863 = vadd.xlane.f32.xlu0 %v854_v9  ;;  %v798_v13 = vmul.f32 %v2547_v6, %v2547_v6  ;;  %v2553_v18 = vmax.f32 %v775_v7, 0.0  ;;  %v2034_v41 = vld [vmem:[#allocation10 + $0xa4] ss:$8 sps:$4 sm:$0xff]   ;;  %v2046_v9 = vld [vmem:[#allocation10 + $0xd4] ss:$8 sps:$4 sm:$0xff]  }
 0x265   :  { %v647_v16 = vpop.f32.mrb[13].mxu1  ;;  %v2562_v34 = vmax.f32 %v786_v14, 0.0  ;;  %v859_v44 = vmul.f32 %v2565_v36, %v2565_v36  ;;  %1010 = vmatprep.subr.bf16.mxu0 %v2034_v41  ;;  %v675_v57 = vadd.f32 %v1860_v12, %v2529_v52  ;;  %v2043_v7 = vld [vmem:[#allocation11 + $0x68] sm:$0xff]   ;;  %v2047_v12 = vld [vmem:[#allocation11 + $0x70] sm:$0xff]  }
 0x266   :  { %v2555_v20 = vmax.f32 %v778_v11, 0.0  ;;  %v1861_v21 = vpop.f32.mrb[14].mxu1  ;;  %v857_v37 = vmul.f32 %v2553_v18, %v2553_v18  ;;  %v673_v43 = vadd.f32 %v2529_v52, %v647_v16  ;;  %1011 = vmatpush1.bf16.msra.mxu0 %v2032_v45  ;;  %1888 = vmatprep.subr.bf16.mxu1 %v2043_v7  ;;  %v2044_v11 = vld [vmem:[#allocation10 + $0xd0] ss:$8 sps:$4 sm:$0xff]   ;;  %v2048_v14 = vld [vmem:[#allocation10 + $0xe0] ss:$8 sps:$4 sm:$0xff]  }
 0x267   :  { %v650_v24 = vpop.f32.mrb[15].mxu1  ;;  %807 = vadd.xlane.f32.xlu1 %v798_v13  ;;  %v860_v40 = vmul.f32 %v2562_v34, %v2562_v34  ;;  %v676_v48 = vadd.f32 %v1861_v21, %v2529_v52  ;;  %1012 = vmatprep.subr.bf16.mxu0 %v2038_v55  ;;  %v2050_v13 = vld [vmem:[#allocation10 + $0xe4] ss:$8 sps:$4 sm:$0xff]   ;;  %v2051_v16 = vld [vmem:[#allocation11 + $0x78] sm:$0xff]  }
 0x268   :  { %805 = vadd.xlane.f32.xlu0 %v797_v22  ;;  %v858_v25 = vmul.f32 %v2555_v20, %v2555_v20  ;;  %v674_v39 = vadd.f32 %v2529_v52, %v650_v24  ;;  %v2585_v58 = vmax.f32 %v673_v43, 0.0  ;;  %v2593_v52 = vmax.f32 %v675_v57, 0.0  ;;  %1889 = vmatpush3.bf16.msra.mxu1 %v2043_v7  ;;  %v2052_v21 = vld [vmem:[#allocation10 + $0xf0] ss:$8 sps:$4 sm:$0xff]  }
 0x269   :  { %v2589_v63 = vmax.f32 %v676_v48, 0.0  ;;  %1890 = vmatprep.subr.bf16.mxu1 %v2047_v12 }
 0x26a   :  { %v2580_v51 = vmax.f32 %v674_v39, 0.0  ;;  %1013 = vmatpush1.bf16.msra.mxu0 %v2036_v61  ;;  %v801_v3 = vmul.f32 %v2585_v58, %v2585_v58  ;;  %v803_v10 = vmul.f32 %v2593_v52, %v2593_v52 }
 0x26b   :  { %871 = vadd.xlane.f32.xlu1 %v858_v25  ;;  %1014 = vmatprep.subr.bf16.mxu0 %v2042_v2  ;;  %v804_v8 = vmul.f32 %v2589_v63, %v2589_v63 }
 0x26c   :  { %869 = vadd.xlane.f32.xlu0 %v857_v37  ;;  %v802_v1 = vmul.f32 %v2580_v51, %v2580_v51  ;;  %1891 = vmatpush3.bf16.msra.mxu1 %v2047_v12 }
 0x26d   :  { %1892 = vmatprep.subr.bf16.mxu1 %v2051_v16 }
 0x26e   :  { %1015 = vmatpush1.bf16.msra.mxu0 %v2040_v4 }
 0x26f   :  { %875 = vadd.xlane.f32.xlu1 %v860_v40  ;;  %1016 = vmatprep.subr.bf16.mxu0 %v2046_v9 }
 0x270   :  { %873 = vadd.xlane.f32.xlu0 %v859_v44  ;;  %1893 = vmatpush3.bf16.msra.mxu1 %v2051_v16 }
 0x272   :  { %1017 = vmatpush1.bf16.msra.mxu0 %v2044_v11 }
 0x273   :  { %811 = vadd.xlane.f32.xlu1 %v800_v54  ;;  %1018 = vmatprep.subr.bf16.mxu0 %v2050_v13 }
 0x274   :  { %809 = vadd.xlane.f32.xlu0 %v799_v60 }
 0x276   :  { %1019 = vmatpush1.bf16.msra.mxu0 %v2048_v14 }
 0x277   :  { %815 = vadd.xlane.f32.xlu1 %v802_v1  ;;  %1020 = vmatprep.subr.bf16.mxu0 %v2054_v17 }
 0x278   :  { %813 = vadd.xlane.f32.xlu0 %v801_v3 }
 0x27a   :  { %1021 = vmatpush1.bf16.msra.mxu0 %v2052_v21 }
 0x27b   :  { %819 = vadd.xlane.f32.xlu1 %v804_v8 }
 0x27c   :  { %817 = vadd.xlane.f32.xlu0 %v803_v10 }
 0x2ec   :  { %v866_v22 = vpop.xlane.xlu1 %865 }
 0x2ed   :  { %v879_v24 = vmax.f32 %v866_v22, 1e-24  ;;  %v862_v25 = vpop.xlane.xlu0 %861 }
 0x2ee   :  { %v877_v26 = vmax.f32 %v862_v25, 1e-24 }
 0x2ef   :  { %2055 = vrsqrt.f32 %v879_v24 }
 0x2f0   :  { %v868_v35 = vpop.xlane.xlu1 %867  ;;  %2057 = vrsqrt.f32 %v877_v26 }
 0x2f1   :  { %v880_v37 = vmax.f32 %v868_v35, 1e-24  ;;  %v864_v39 = vpop.xlane.xlu0 %863 }
 0x2f2   :  { %v878_v40 = vmax.f32 %v864_v39, 1e-24 }
 0x2f3   :  { %2059 = vrsqrt.f32 %v880_v37 }
 0x2f4   :  { %2061 = vrsqrt.f32 %v878_v40  ;;  %v808_v41 = vpop.xlane.xlu1 %807 }
 0x2f5   :  { %v822_v43 = vmax.f32 %v808_v41, 1e-24  ;;  %v806_v44 = vpop.xlane.xlu0 %805 }
 0x2f6   :  { %v821_v45 = vmax.f32 %v806_v44, 1e-24 }
 0x2f7   :  { %2063 = vrsqrt.f32 %v822_v43 }
 0x2f8   :  { %2065 = vrsqrt.f32 %v821_v45  ;;  %v872_v46 = vpop.xlane.xlu1 %871 }
 0x2f9   :  { %v882_v48 = vmax.f32 %v872_v46, 1e-24  ;;  %v870_v54 = vpop.xlane.xlu0 %869  ;;  %v2056_v57 = vpop.eup %2055 }
 0x2fa   :  { %v881_v55 = vmax.f32 %v870_v54, 1e-24  ;;  %v2058_v60 = vpop.eup %2057  ;;  %v895_v10 = vmul.f32 %v2056_v57, %v2524_v47 }
 0x2fb   :  { %2067 = vrsqrt.f32 %v882_v48  ;;  %v893_v8 = vmul.f32 %v2058_v60, %v2531_v53 }
 0x2fc   :  { %2069 = vrsqrt.f32 %v881_v55  ;;  %v876_v61 = vpop.xlane.xlu1 %875 }
 0x2fd   :  { %v2060_v62 = vpop.eup %2059  ;;  %v884_v1 = vmax.f32 %v876_v61, 1e-24  ;;  %v874_v2 = vpop.xlane.xlu0 %873 }
 0x2fe   :  { %v2062_v3 = vpop.eup %2061  ;;  %v896_v4 = vmul.f32 %v2060_v62, %v2533_v56  ;;  %v883_v7 = vmax.f32 %v874_v2, 1e-24 }
 0x2ff   :  { %2071 = vrsqrt.f32 %v884_v1  ;;  %v894_v9 = vmul.f32 %v2062_v3, %v2537_v59 }
 0x300   :  { %2073 = vrsqrt.f32 %v883_v7  ;;  %v812_v11 = vpop.xlane.xlu1 %811  ;;  %v906_v24 = vpack.c.bf16 %v896_v4, %v895_v10 }
 0x301   :  { %v2064_v12 = vpop.eup %2063  ;;  %v824_v13 = vmax.f32 %v812_v11, 1e-24  ;;  %v810_v14 = vpop.xlane.xlu0 %809  ;;  %v905_v16 = vpack.c.bf16 %v894_v9, %v893_v8 }
 0x302   :  { %v2066_v17 = vpop.eup %2065  ;;  %v838_v21 = vmul.f32 %v2064_v12, %v2547_v6  ;;  %v823_v22 = vmax.f32 %v810_v14, 1e-24 }
 0x303   :  { %v837_v56 = vmul.f32 %v2066_v17, %v2545_v5  ;;  %2075 = vrsqrt.f32 %v824_v13  ;;  %1894 = vmatprep.mubr.bf16.mxu1 %v905_v16 }
 0x304   :  { %2077 = vrsqrt.f32 %v823_v22  ;;  %v816_v53 = vpop.xlane.xlu1 %815  ;;  %1895 = vmatmul.mubr.bf16.vlgmr.msra.gmra.mrb[16].mxu1 %v906_v24 }
 0x305   :  { %v2068_v59 = vpop.eup %2067  ;;  %v826_v47 = vmax.f32 %v816_v53, 1e-24  ;;  %v814_v25 = vpop.xlane.xlu0 %813  ;;  %v901_v26 = vpack.c.bf16 %v838_v21, %v837_v56 }
 0x306   :  { %v2070_v35 = vpop.eup %2069  ;;  %v825_v37 = vmax.f32 %v814_v25, 1e-24  ;;  %v898_v39 = vmul.f32 %v2068_v59, %v2555_v20 }
 0x307   :  { %2079 = vrsqrt.f32 %v826_v47  ;;  %1039 = vmatmul.mubr.bf16.vlgmr.msra.gmra.mrb[24].mxu0 %v901_v26  ;;  %v897_v6 = vmul.f32 %v2070_v35, %v2553_v18 }
 0x308   :  { %2081 = vrsqrt.f32 %v825_v37  ;;  %v820_v40 = vpop.xlane.xlu1 %819  ;;  %1048 = vmatprep.mubr.bf16.mxu0 %v2325_v0 }
 0x309   :  { %v2072_v5 = vpop.eup %2071  ;;  %v818_v41 = vpop.xlane.xlu0 %817  ;;  %v907_v43 = vpack.c.bf16 %v898_v39, %v897_v6  ;;  %v828_v46 = vmax.f32 %v820_v40, 1e-24 }
 0x30a   :  { %v2074_v44 = vpop.eup %2073  ;;  %v900_v45 = vmul.f32 %v2072_v5, %v2562_v34  ;;  %v827_v54 = vmax.f32 %v818_v41, 1e-24 }
 0x30b   :  { %1898 = vmatprep.mubr.bf16.mxu1 %v907_v43  ;;  %v899_v48 = vmul.f32 %v2074_v44, %v2565_v36  ;;  %2083 = vrsqrt.f32 %v828_v46 }
 0x30c   :  { %2085 = vrsqrt.f32 %v827_v54 }
 0x30d   :  { %v2076_v20 = vpop.eup %2075  ;;  %v908_v55 = vpack.c.bf16 %v900_v45, %v899_v48 }
 0x30e   :  { %v2078_v57 = vpop.eup %2077  ;;  %v840_v18 = vmul.f32 %v2076_v20, %v2569_v38 }
 0x30f   :  { %1899 = vmatmul.mubr.bf16.gmra.mrb[20].mxu1 %v908_v55  ;;  %v839_v60 = vmul.f32 %v2078_v57, %v2574_v42 }
 0x310   :  { %1910 = vmatprep.mubr.msk.bf16.mxu1 %vm487_vm0, %v2472_v49 }
 0x311   :  { %v2080_v61 = vpop.eup %2079  ;;  %v902_v34 = vpack.c.bf16 %v840_v18, %v839_v60 }
 0x312   :  { %v2082_v62 = vpop.eup %2081  ;;  %v842_v1 = vmul.f32 %v2080_v61, %v2580_v51 }
 0x313   :  { %1049 = vmatmul.mubr.bf16.gmra.mrb[28].mxu0 %v902_v34  ;;  %v841_v36 = vmul.f32 %v2082_v62, %v2585_v58 }
 0x314   :  { %1058 = vmatprep.mubr.bf16.mxu0 %v2325_v0 }
 0x315   :  { %v2084_v2 = vpop.eup %2083  ;;  %v903_v38 = vpack.c.bf16 %v842_v1, %v841_v36 }
 0x316   :  { %v2086_v3 = vpop.eup %2085  ;;  %v844_v49 = vmul.f32 %v2084_v2, %v2589_v63 }
 0x317   :  { %v843_v42 = vmul.f32 %v2086_v3, %v2593_v52 }
 0x319   :  { %v904_v4 = vpack.c.bf16 %v844_v49, %v843_v42 }
 0x31b   :  { %1059 = vmatmul.mubr.bf16.gmra.mrb[32].mxu0 %v903_v38 }
 0x31c   :  { %1068 = vmatprep.mubr.bf16.mxu0 %v2325_v0 }
 0x323   :  { %1069 = vmatmul.mubr.bf16.gmra.mrb[36].mxu0 %v904_v4 }
 0x324   :  { %1942 = vmatprep.mubr.msk.bf16.mxu0 %vm487_vm0, %v2476_v50 }
 0x3d7   :  { %v1896_v7 = vpop.f32.mrb[16].mxu1 }
 0x3d8   :  { %v1186_v8 = vpop.f32.mrb[17].mxu1 }
 0x3d9   :  { %v1897_v58 = vpop.f32.mrb[18].mxu1 }
 0x3da   :  { %v1218_v9 = vpack.c.bf16 %v1897_v58, %v1896_v7  ;;  %v1040_v51 = vpop.f32.mrb[24].mxu0  ;;  %v1189_v10 = vpop.f32.mrb[19].mxu1 }
 0x3db   :  { %v1217_v11 = vpack.c.bf16 %v1189_v10, %v1186_v8  ;;  %v1042_v12 = vpop.f32.mrb[25].mxu0 }
 0x3dc   :  { %v1044_v13 = vpop.f32.mrb[26].mxu0 }
 0x3dd   :  { %v1079_v14 = vpack.c.bf16 %v1044_v13, %v1040_v51  ;;  %v1046_v0 = vpop.f32.mrb[27].mxu0  ;;  %1902 = vmatprep.subr.bf16.mxu1 %v1217_v11 }
 0x3de   :  { %v1080_v52 = vpack.c.bf16 %v1046_v0, %v1042_v12  ;;  %1903 = vmatpush3.bf16.msra.mxu1 %v1217_v11 }
 0x3df   :  { %1904 = vmatprep.subr.bf16.mxu1 %v1218_v9 }
 0x3e0   :  { %1934 = vmatprep.subr.bf16.mxu0 %v1080_v52 }
 0x3e1   :  { %1935 = vmatpush3.bf16.msra.mxu0 %v1080_v52 }
 0x3e2   :  { %v1900_v63 = vpop.f32.mrb[20].mxu1  ;;  %1905 = vmatpush3.bf16.msra.mxu1 %v1218_v9 }
 0x3e3   :  { %v1202_v50 = vpop.f32.mrb[21].mxu1 }
 0x3e4   :  { %v1901_v16 = vpop.f32.mrb[22].mxu1 }
 0x3e5   :  { %v1220_v17 = vpack.c.bf16 %v1901_v16, %v1900_v63  ;;  %v1205_v21 = vpop.f32.mrb[23].mxu1 }
 0x3e6   :  { %v1219_v22 = vpack.c.bf16 %v1205_v21, %v1202_v50  ;;  %v1050_v24 = vpop.f32.mrb[28].mxu0 }
 0x3e7   :  { %v1052_v56 = vpop.f32.mrb[29].mxu0 }
 0x3e8   :  { %v1054_v53 = vpop.f32.mrb[30].mxu0  ;;  %1906 = vmatprep.subr.bf16.mxu1 %v1219_v22 }
 0x3e9   :  { %v1081_v59 = vpack.c.bf16 %v1054_v53, %v1050_v24  ;;  %v1056_v47 = vpop.f32.mrb[31].mxu0  ;;  %1907 = vmatpush3.bf16.msra.mxu1 %v1219_v22 }
 0x3ea   :  { %v1082_v25 = vpack.c.bf16 %v1056_v47, %v1052_v56  ;;  %1908 = vmatprep.subr.bf16.mxu1 %v1220_v17 }
 0x3ec   :  { %1936 = vmatprep.subr.bf16.mxu0 %v1082_v25 }
 0x3ed   :  { %1909 = vmatpush3.bf16.msra.mxu1 %v1220_v17  ;;  %1937 = vmatpush3.bf16.msra.mxu0 %v1082_v25 }
 0x3ee   :  { %v1060_v26 = vpop.f32.mrb[32].mxu0  ;;  %1918 = vmatprep.subr.bf16.mxu1 %v1079_v14 }
 0x3ef   :  { %v1062_v35 = vpop.f32.mrb[33].mxu0 }
 0x3f0   :  { %v1064_v37 = vpop.f32.mrb[34].mxu0  ;;  %1911 = vmatmul.mubr.msk.bf16.vlgmr.msra.gmra.mrb[24].mxu1 %vm487_vm0, %v2480_v15 }
 0x3f1   :  { %v1083_v39 = vpack.c.bf16 %v1064_v37, %v1060_v26  ;;  %v1066_v6 = vpop.f32.mrb[35].mxu0  ;;  %1919 = vmatpush3.bf16.msra.mxu1 %v1079_v14  ;;  %1914 = vmatprep.mubr.msk.bf16.mxu1 %vm487_vm0, %v2482_v19  ;;  %v1727_v19 = vld [vmem:[%s2776_s6 + $0x1] ss:$0 sm:$0xff]  ;;  %s2326_s6 = smov [#allocation13]  }
 0x3f2   :  { %v1084_v40 = vpack.c.bf16 %v1066_v6, %v1062_v35  ;;  %1920 = vmatprep.subr.bf16.mxu1 %v1081_v59 }
 0x3f4   :  { %1938 = vmatprep.subr.bf16.mxu0 %v1084_v40 }
 0x3f5   :  { %1921 = vmatpush3.bf16.msra.mxu1 %v1081_v59  ;;  %1939 = vmatpush3.bf16.msra.mxu0 %v1084_v40 }
 0x3f6   :  { %v1070_v5 = vpop.f32.mrb[36].mxu0  ;;  %1922 = vmatprep.subr.bf16.mxu1 %v1083_v39 }
 0x3f7   :  { %v1072_v41 = vpop.f32.mrb[37].mxu0 }
 0x3f8   :  { %v1074_v43 = vpop.f32.mrb[38].mxu0  ;;  %1915 = vmatmul.mubr.msk.bf16.gmra.mrb[28].mxu1 %vm487_vm0, %v2488_v23  ;;  %v2650_v23 = vld [vmem:[%s2777_s7 + $0x1] ss:$0 sm:$0xff]  ;;  %s1613_s7 = sshll.u32 %s2326_s6, 4  ;;  %s1614_s7 = int_to_ptr.vmem [resolvable:$true] %s1613_s7 }
 0x3f9   :  { %v1085_v44 = vpack.c.bf16 %v1074_v43, %v1070_v5  ;;  %v1076_v15 = vpop.f32.mrb[39].mxu0  ;;  %1923 = vmatpush3.bf16.msra.mxu1 %v1083_v39  ;;  %1926 = vmatprep.mubr.msk.bf16.mxu1 %vm487_vm0, %v2490_v27  ;;  %s2259_s11 = scalar_lea.vmem %s1614_s7, 1024  ;;  %p2264_p7 = scmp.lt.s32.totalorder %s1614_s7, %s1614_s7 }
 0x3fa   :  { %v1086_v45 = vpack.c.bf16 %v1076_v15, %v1072_v41  ;;  %p2260_p6 = scmp.ne.s32.totalorder %s1614_s7, %s2259_s11  ;;  %p2265_p8 = scmp.lt.s32.totalorder %s2259_s11, %s2259_s11 }
 0x3fb   :  { %1924 = vmatprep.subr.bf16.mxu1 %v1085_v44 }
 0x3fc   :  { %1940 = vmatprep.subr.bf16.mxu0 %v1086_v45  ;;  %p2266_p9 = por %p2265_p8, %p2264_p7 }
 0x3fd   :  { %1925 = vmatpush3.bf16.msra.mxu1 %v1085_v44  ;;  %1941 = vmatpush3.bf16.msra.mxu0 %v1086_v45 }
 0x3fe   :  { %p2267_p10 = pnand %p2266_p9, %p2260_p6 }
 0x400   :  { %1927 = vmatmul.mubr.msk.bf16.vlgmr.msra.gmra.mrb[24].mxu1 %vm487_vm0, %v2502_v30  ;;  %1943 = vmatmul.mubr.msk.bf16.vlgmr.msra.gmra.mrb[40].mxu0 %vm487_vm0, %v2494_v28 }
 0x401   :  { %1930 = vmatprep.mubr.msk.bf16.mxu1 %vm487_vm0, %v2506_v31  ;;  %1946 = vmatprep.mubr.msk.bf16.mxu0 %vm487_vm0, %v2496_v29 }
 0x408   :  { %1931 = vmatmul.mubr.msk.bf16.gmra.mrb[28].mxu1 %vm487_vm0, %v2516_v33  ;;  %1947 = vmatmul.mubr.msk.bf16.gmra.mrb[44].mxu0 %vm487_vm0, %v2510_v32 }
 0x4d3   :  { %v1928_v27 = vpop.f32.mrb[24].mxu1  ;;  %v1944_v28 = vpop.f32.mrb[40].mxu0 }
 0x4d4   :  { %v1361_v30 = vadd.f32 %v1928_v27, %v1727_v19  ;;  %v1418_v29 = vadd.f32 %v1944_v28, %v2650_v23  ;;  %v1320_v31 = vpop.f32.mrb[25].mxu1  ;;  %v1409_v46 = vpop.f32.mrb[41].mxu0 }
 0x4d5   :  { %v1929_v33 = vpop.f32.mrb[26].mxu1  ;;  %v1945_v48 = vpop.f32.mrb[42].mxu0  ;;  %v1410_v60 = vadd.f32 %v2650_v23, %v1409_v46  ;;  %v1359_v3 = vadd.f32 %v1727_v19, %v1320_v31 }
 0x4d6   :  { %v2653_v54 = vmax.f32 %v1418_v29, 0.0  ;;  %v1362_v32 = vadd.f32 %v1929_v33, %v1727_v19  ;;  %v1421_v20 = vadd.f32 %v1945_v48, %v2650_v23  ;;  %v1323_v55 = vpop.f32.mrb[27].mxu1  ;;  %v1412_v57 = vpop.f32.mrb[43].mxu0  ;;  %v2656_v18 = vmax.f32 %v1361_v30, 0.0 }
 0x4d7   :  { %v1413_v36 = vadd.f32 %v2650_v23, %v1412_v57  ;;  %v2668_v42 = vmax.f32 %v1410_v60, 0.0  ;;  %v1360_v9 = vadd.f32 %v1727_v19, %v1323_v55  ;;  %v2676_v13 = vmax.f32 %v1359_v3, 0.0 }
 0x4d8   :  { %v2659_v61 = vmax.f32 %v1421_v20, 0.0  ;;  %v1506_v34 = vmul.f32 %v2653_v54, %v2653_v54  ;;  %v2663_v62 = vmax.f32 %v1362_v32, 0.0  ;;  %v1450_v4 = vmul.f32 %v2656_v18, %v2656_v18 }
 0x4d9   :  { %v2672_v51 = vmax.f32 %v1413_v36, 0.0  ;;  %v1504_v0 = vmul.f32 %v2668_v42, %v2668_v42  ;;  %v2680_v52 = vmax.f32 %v1360_v9, 0.0  ;;  %v1448_v21 = vmul.f32 %v2676_v13, %v2676_v13  ;;  %v1578_v36 = vld [vmem:[#allocation8 + $0x10] sm:$0xff] }
 0x4da   :  { %1516 = vadd.xlane.f32.xlu0 %v1506_v34  ;;  %v1507_v1 = vmul.f32 %v2659_v61, %v2659_v61  ;;  %v1451_v11 = vmul.f32 %v2663_v62, %v2663_v62 }
 0x4db   :  { %v1932_v2 = vpop.f32.mrb[28].mxu1  ;;  %v1948_v38 = vpop.f32.mrb[44].mxu0  ;;  %v1505_v50 = vmul.f32 %v2672_v51, %v2672_v51  ;;  %v1449_v56 = vmul.f32 %v2680_v52, %v2680_v52 }
 0x4dc   :  { %v1336_v49 = vpop.f32.mrb[29].mxu1  ;;  %1518 = vadd.xlane.f32.xlu1 %v1507_v1  ;;  %v1425_v7 = vpop.f32.mrb[45].mxu0  ;;  %v1365_v14 = vadd.f32 %v1932_v2, %v1727_v19  ;;  %v1434_v6 = vadd.f32 %v1948_v38, %v2650_v23 }
 0x4dd   :  { %v1933_v8 = vpop.f32.mrb[30].mxu1  ;;  %v1949_v58 = vpop.f32.mrb[46].mxu0  ;;  %v1426_v16 = vadd.f32 %v2650_v23, %v1425_v7  ;;  %v1363_v59 = vadd.f32 %v1727_v19, %v1336_v49  ;;  %v1579_v49 = vld [vmem:[#allocation8 + $0x18] sm:$0xff] }
 0x4de   :  { %v1339_v10 = vpop.f32.mrb[31].mxu1  ;;  %1460 = vadd.xlane.f32.xlu0 %v1450_v4  ;;  %v1428_v12 = vpop.f32.mrb[47].mxu0  ;;  %v1366_v63 = vadd.f32 %v1933_v8, %v1727_v19  ;;  %v2685_v17 = vmax.f32 %v1365_v14, 0.0  ;;  %v1437_v5 = vadd.f32 %v1949_v58, %v2650_v23  ;;  %v2712_v43 = vmax.f32 %v1434_v6, 0.0 }
 0x4df   :  { %v2691_v24 = vmax.f32 %v1426_v16, 0.0  ;;  %v1429_v53 = vadd.f32 %v2650_v23, %v1428_v12  ;;  %v1364_v25 = vadd.f32 %v1727_v19, %v1339_v10  ;;  %v2704_v39 = vmax.f32 %v1363_v59, 0.0  ;;  %v2119_v16 = vld [vmem:[#allocation7 + $0x10] sm:$0xff]  ;;  %v1576_v59 = vld [vmem:[#allocation8] sm:$0xff] }
 0x4e0   :  { %1462 = vadd.xlane.f32.xlu1 %v1451_v11  ;;  %v2689_v22 = vmax.f32 %v1366_v63, 0.0  ;;  %v1454_v47 = vmul.f32 %v2685_v17, %v2685_v17  ;;  %v2716_v15 = vmax.f32 %v1437_v5, 0.0  ;;  %v1510_v19 = vmul.f32 %v2712_v43, %v2712_v43 }
 0x4e1   :  { %v2698_v26 = vmax.f32 %v1429_v53, 0.0  ;;  %v1508_v37 = vmul.f32 %v2691_v24, %v2691_v24  ;;  %v2707_v40 = vmax.f32 %v1364_v25, 0.0  ;;  %v1452_v44 = vmul.f32 %v2704_v39, %v2704_v39 }
 0x4e2   :  { %1512 = vadd.xlane.f32.xlu0 %v1504_v0  ;;  %v1455_v35 = vmul.f32 %v2689_v22, %v2689_v22  ;;  %v1511_v23 = vmul.f32 %v2716_v15, %v2716_v15 }
 0x4e3   :  { %v1509_v41 = vmul.f32 %v2698_v26, %v2698_v26  ;;  %v1453_v45 = vmul.f32 %v2707_v40, %v2707_v40 }
 0x4e4   :  { %1514 = vadd.xlane.f32.xlu1 %v1505_v50 }
 0x4e6   :  { %1456 = vadd.xlane.f32.xlu0 %v1448_v21 }
 0x4e8   :  { %1458 = vadd.xlane.f32.xlu1 %v1449_v56 }
 0x4ea   :  { %1468 = vadd.xlane.f32.xlu0 %v1454_v47 }
 0x4ec   :  { %1470 = vadd.xlane.f32.xlu1 %v1455_v35  ;;  %v2120_v35 = vld [vmem:[#allocation7 + $0x18] sm:$0xff] }
 0x4ee   :  { %1520 = vadd.xlane.f32.xlu0 %v1508_v37 }
 0x4f0   :  { %1522 = vadd.xlane.f32.xlu1 %v1509_v41  ;;  %v1577_v41 = vld [vmem:[#allocation8 + $0x8] sm:$0xff] }
 0x4f2   :  { %1464 = vadd.xlane.f32.xlu0 %v1452_v44 }
 0x4f4   :  { %1466 = vadd.xlane.f32.xlu1 %v1453_v45 }
 0x4f6   :  { %1524 = vadd.xlane.f32.xlu0 %v1510_v19 }
 0x4f8   :  { %1526 = vadd.xlane.f32.xlu1 %v1511_v23 }
 0x567   :  { %v1517_v27 = vpop.xlane.xlu0 %1516 }
 0x568   :  { %v1530_v28 = vmax.f32 %v1517_v27, 1e-24 }
 0x569   :  { %v1519_v30 = vpop.xlane.xlu1 %1518 }
 0x56a   :  { %2087 = vrsqrt.f32 %v1530_v28  ;;  %v1531_v29 = vmax.f32 %v1519_v30, 1e-24 }
 0x56b   :  { %v1461_v31 = vpop.xlane.xlu0 %1460 }
 0x56c   :  { %2089 = vrsqrt.f32 %v1531_v29  ;;  %v1474_v46 = vmax.f32 %v1461_v31, 1e-24 }
 0x56d   :  { %v1463_v33 = vpop.xlane.xlu1 %1462 }
 0x56e   :  { %2091 = vrsqrt.f32 %v1474_v46  ;;  %v1475_v48 = vmax.f32 %v1463_v33, 1e-24 }
 0x56f   :  { %v1513_v32 = vpop.xlane.xlu0 %1512 }
 0x570   :  { %2093 = vrsqrt.f32 %v1475_v48  ;;  %v1528_v20 = vmax.f32 %v1513_v32, 1e-24  ;;  %v2121_v32 = vld [vmem:[#allocation7] sm:$0xff] }
 0x571   :  { %v1515_v55 = vpop.xlane.xlu1 %1514 }
 0x572   :  { %2095 = vrsqrt.f32 %v1528_v20  ;;  %v1529_v57 = vmax.f32 %v1515_v55, 1e-24 }
 0x573   :  { %v1457_v60 = vpop.xlane.xlu0 %1456 }
 0x574   :  { %v2088_v34 = vpop.eup %2087  ;;  %2097 = vrsqrt.f32 %v1529_v57  ;;  %v1472_v1 = vmax.f32 %v1457_v60, 1e-24 }
 0x575   :  { %v1546_v2 = vmul.f32 %v2088_v34, %v2653_v54  ;;  %v1459_v38 = vpop.xlane.xlu1 %1458 }
 0x576   :  { %v2090_v3 = vpop.eup %2089  ;;  %2099 = vrsqrt.f32 %v1472_v1  ;;  %v1473_v4 = vmax.f32 %v1459_v38, 1e-24 }
 0x577   :  { %v1586_v7 = vadd.f32 %v1578_v36, %v1546_v2  ;;  %v1547_v8 = vmul.f32 %v2090_v3, %v2659_v61  ;;  %v1469_v58 = vpop.xlane.xlu0 %1468  ;;  %v2122_v36 = vld [vmem:[#allocation7 + $0x8] sm:$0xff] }
 0x578   :  { %v2092_v9 = vpop.eup %2091  ;;  %2101 = vrsqrt.f32 %v1473_v4  ;;  %v1478_v10 = vmax.f32 %v1469_v58, 1e-24  ;;  %v2123_v4 = vld [vmem:[#allocation7 + $0x30] sm:$0xff]  ;;  %v1580_v58 = vld [vmem:[#allocation8 + $0x20] sm:$0xff] }
 0x579   :  { %v1594_v11 = vmax.f32 %v1586_v7, 0.0  ;;  %v1587_v12 = vadd.f32 %v1579_v49, %v1547_v8  ;;  %v1490_v14 = vmul.f32 %v2092_v9, %v2656_v18  ;;  %v1471_v0 = vpop.xlane.xlu1 %1470 }
 0x57a   :  { %v2094_v63 = vpop.eup %2093  ;;  %2103 = vrsqrt.f32 %v1478_v10  ;;  %v1479_v54 = vmax.f32 %v1471_v0, 1e-24  ;;  %v2124_v10 = vld [vmem:[#allocation7 + $0x38] sm:$0xff] }
 0x57b   :  { %1602 = vst [vmem:[#allocation14 + $0x10] sm:$0xff] %v1594_v11  ;;  %v1595_v50 = vmax.f32 %v1587_v12, 0.0  ;;  %v1554_v21 = vadd.f32 %v2119_v16, %v1490_v14  ;;  %v1491_v56 = vmul.f32 %v2094_v63, %v2663_v62  ;;  %v1521_v53 = vpop.xlane.xlu0 %1520  ;;  %v1581_v14 = vld [vmem:[#allocation8 + $0x28] sm:$0xff] }
 0x57c   :  { %v2096_v61 = vpop.eup %2095  ;;  %2105 = vrsqrt.f32 %v1479_v54  ;;  %v1532_v47 = vmax.f32 %v1521_v53, 1e-24 }
 0x57d   :  { %1603 = vst [vmem:[#allocation14 + $0x18] sm:$0xff] %v1595_v50  ;;  %v1562_v25 = vmax.f32 %v1554_v21, 0.0  ;;  %v1555_v37 = vadd.f32 %v2120_v35, %v1491_v56  ;;  %v1544_v18 = vmul.f32 %v2096_v61, %v2668_v42  ;;  %v1523_v6 = vpop.xlane.xlu1 %1522  ;;  %v2125_v61 = vld [vmem:[#allocation7 + $0x20] sm:$0xff] }
 0x57e   :  { %v2098_v5 = vpop.eup %2097  ;;  %2107 = vrsqrt.f32 %v1532_v47  ;;  %v1533_v44 = vmax.f32 %v1523_v6, 1e-24 }
 0x57f   :  { %1570 = vst [vmem:[#allocation13 + $0x10] sm:$0xff] %v1562_v25  ;;  %v1563_v45 = vmax.f32 %v1555_v37, 0.0  ;;  %v1584_v19 = vadd.f32 %v1576_v59, %v1544_v18  ;;  %v1545_v62 = vmul.f32 %v2098_v5, %v2672_v51  ;;  %v1465_v23 = vpop.xlane.xlu0 %1464  ;;  %v1582_v25 = vld [vmem:[#allocation8 + $0x30] sm:$0xff]  ;;  %v1583_v5 = vld [vmem:[#allocation8 + $0x38] sm:$0xff] }
 0x580   :  { %v2100_v27 = vpop.eup %2099  ;;  %2109 = vrsqrt.f32 %v1533_v44  ;;  %v1476_v28 = vmax.f32 %v1465_v23, 1e-24 }
 0x581   :  { %1571 = vst [vmem:[#allocation13 + $0x18] sm:$0xff] %v1563_v45  ;;  %v1592_v30 = vmax.f32 %v1584_v19, 0.0  ;;  %v1585_v29 = vadd.f32 %v1577_v41, %v1545_v62  ;;  %v1488_v31 = vmul.f32 %v2100_v27, %v2676_v13  ;;  %v1467_v42 = vpop.xlane.xlu1 %1466 }
 0x582   :  { %v2102_v46 = vpop.eup %2101  ;;  %2111 = vrsqrt.f32 %v1476_v28  ;;  %v1477_v33 = vmax.f32 %v1467_v42, 1e-24 }
 0x583   :  { %1600 = vst [vmem:[#allocation14] sm:$0xff] %v1592_v30  ;;  %v1593_v48 = vmax.f32 %v1585_v29, 0.0  ;;  %v1552_v20 = vadd.f32 %v2121_v32, %v1488_v31  ;;  %v1489_v55 = vmul.f32 %v2102_v46, %v2680_v52  ;;  %v1525_v51 = vpop.xlane.xlu0 %1524 }
 0x584   :  { %v2104_v57 = vpop.eup %2103  ;;  %2113 = vrsqrt.f32 %v1477_v33  ;;  %v1534_v60 = vmax.f32 %v1525_v51, 1e-24 }
 0x585   :  { %1601 = vst [vmem:[#allocation14 + $0x8] sm:$0xff] %v1593_v48  ;;  %v1560_v34 = vmax.f32 %v1552_v20, 0.0  ;;  %v1553_v1 = vadd.f32 %v2122_v36, %v1489_v55  ;;  %v1494_v13 = vmul.f32 %v2104_v57, %v2685_v17  ;;  %v1527_v2 = vpop.xlane.xlu1 %1526 }
 0x586   :  { %v2106_v38 = vpop.eup %2105  ;;  %2115 = vrsqrt.f32 %v1534_v60  ;;  %v1535_v3 = vmax.f32 %v1527_v2, 1e-24 }
 0x587   :  { %1568 = vst [vmem:[#allocation13] sm:$0xff] %v1560_v34  ;;  %v1561_v49 = vmax.f32 %v1553_v1, 0.0  ;;  %v1558_v7 = vadd.f32 %v2123_v4, %v1494_v13  ;;  %v1495_v52 = vmul.f32 %v2106_v38, %v2689_v22 }
 0x588   :  { %v2108_v8 = vpop.eup %2107  ;;  %2117 = vrsqrt.f32 %v1535_v3 }
 0x589   :  { %1569 = vst [vmem:[#allocation13 + $0x8] sm:$0xff] %v1561_v49  ;;  %v1566_v9 = vmax.f32 %v1558_v7, 0.0  ;;  %v1559_v11 = vadd.f32 %v2124_v10, %v1495_v52  ;;  %v1548_v12 = vmul.f32 %v2108_v8, %v2691_v24 }
 0x58a   :  { %v2110_v17 = vpop.eup %2109 }
 0x58b   :  { %1574 = vst [vmem:[#allocation13 + $0x30] sm:$0xff] %v1566_v9  ;;  %v1567_v0 = vmax.f32 %v1559_v11, 0.0  ;;  %v1588_v63 = vadd.f32 %v1580_v58, %v1548_v12  ;;  %v1549_v54 = vmul.f32 %v2110_v17, %v2698_v26  ;;  %v2126_v26 = vld [vmem:[#allocation7 + $0x28] sm:$0xff] }
 0x58c   :  { %v2112_v50 = vpop.eup %2111 }
 0x58d   :  { %1575 = vst [vmem:[#allocation13 + $0x38] sm:$0xff] %v1567_v0  ;;  %v1596_v16 = vmax.f32 %v1588_v63, 0.0  ;;  %v1589_v22 = vadd.f32 %v1581_v14, %v1549_v54  ;;  %v1492_v21 = vmul.f32 %v2112_v50, %v2704_v39 }
 0x58e   :  { %v2114_v56 = vpop.eup %2113 }
 0x58f   :  { %1604 = vst [vmem:[#allocation14 + $0x20] sm:$0xff] %v1596_v16  ;;  %v1597_v53 = vmax.f32 %v1589_v22, 0.0  ;;  %v1556_v59 = vadd.f32 %v2125_v61, %v1492_v21  ;;  %v1493_v24 = vmul.f32 %v2114_v56, %v2707_v40 }
 0x590   :  { %v2116_v47 = vpop.eup %2115 }
 0x591   :  { %1605 = vst [vmem:[#allocation14 + $0x28] sm:$0xff] %v1597_v53  ;;  %v1564_v35 = vmax.f32 %v1556_v59, 0.0  ;;  %v1557_v37 = vadd.f32 %v2126_v26, %v1493_v24  ;;  %v1550_v18 = vmul.f32 %v2116_v47, %v2712_v43 }
 0x592   :  { %v2118_v6 = vpop.eup %2117 }
 0x593   :  { %1572 = vst [vmem:[#allocation13 + $0x20] sm:$0xff] %v1564_v35  ;;  %v1565_v39 = vmax.f32 %v1557_v37, 0.0  ;;  %v1590_v41 = vadd.f32 %v1582_v25, %v1550_v18  ;;  %v1551_v44 = vmul.f32 %v2118_v6, %v2716_v15 }
 0x595   :  { %1573 = vst [vmem:[#allocation13 + $0x28] sm:$0xff] %v1565_v39  ;;  %v1598_v40 = vmax.f32 %v1590_v41, 0.0  ;;  %v1591_v45 = vadd.f32 %v1583_v5, %v1551_v44 }
 0x596   :  { %2270 = shalt.err (!%p2267_p10)
}
 0x597   :  { %s2271_s13 = scalar_lea.hbm %s2778_s8, 1024 }
 0x598   :  { %p2272_p11 = scmp.ne.s32.totalorder %s2778_s8, %s2271_s13  ;;  %p2275_p12 = scmp.lt.u32.totalorder %s2271_s13, %s2778_s8 }
 0x59a   :  { %p2277_p13 = pnand %p2275_p12, %p2272_p11 }
 0x59c   :  { %2280 = shalt.err (!%p2277_p13)
}
 0x59d   :  { %1619 = dma.vmem_to_hbm [thread:$0]  %s1614_s7, 1024, %s2778_s8, [#allocation4], %s2320_s10, %s2320_s10, %s2321_s14   ;;  %1606 = vst [vmem:[#allocation14 + $0x30] sm:$0xff] %v1598_v40  ;;  %v1599_v43 = vmax.f32 %v1591_v45, 0.0 }
 0x59e   :  { %s2281_s0 = scalar_lea.vmem %s1626_s29, 1024  ;;  %p2286_p1 = scmp.lt.s32.totalorder %s1626_s29, %s1626_s29 }
 0x59f   :  { %1607 = vst [vmem:[#allocation14 + $0x38] sm:$0xff] %v1599_v43  ;;  %p2282_p0 = scmp.ne.s32.totalorder %s1626_s29, %s2281_s0  ;;  %p2287_p2 = scmp.lt.s32.totalorder %s2281_s0, %s2281_s0 }
 0x5a1   :  { %p2288_p3 = por %p2287_p2, %p2286_p1 }
 0x5a3   :  { %p2289_p4 = pnand %p2288_p3, %p2282_p0 }
 0x5a5   :  { %2292 = shalt.err (!%p2289_p4)
}
 0x5a6   :  { %s2293_s4 = scalar_lea.hbm %s2779_s9, 1024 }
 0x5a7   :  { %p2294_p5 = scmp.ne.s32.totalorder %s2779_s9, %s2293_s4  ;;  %p2297_p6 = scmp.lt.u32.totalorder %s2293_s4, %s2779_s9 }
 0x5a9   :  { %p2299_p7 = pnand %p2297_p6, %p2294_p5 }
 0x5ab   :  { %2302 = shalt.err (!%p2299_p7)
}
 0x5ac   :  { %1631 = dma.vmem_to_hbm [thread:$0]  %s1626_s29, 1024, %s2779_s9, [#allocation15], %s2320_s10, %s2320_s10, %s2321_s14  }
 0x5ad   :  { %2311 = dma.done.wait [#allocation4], 1024  }
 0x5ae   :  { %2312 = vsyncadd [#allocation4], 4294966272 }
 0x5af   :  { %2313 = dma.done.wait [#allocation15], 1024  }
 0x5b0   :  { %2314 = vsyncadd [#allocation15], 4294966272 }
 0x5b1   :  { %1638 = vsyncpa [#allocation3], 1 }
 0x5b2   :  { %1639 = vsyncpa [#allocation6], 1 }
 0x5b3   :  { %1640 = vsyncpa [#allocation9], 1 }
 0x5b4   :  { %1641 = vsyncpa [#allocation12], 1 }
 0x5b5   :  { %1642 = vsyncpa [#allocation4], 1 }
 0x5b6   :  { %1643 = vsyncpa [#allocation15], 1 }

</bundles_post_ra>
